<compile_context>
chip_gen: v5e
topology: v5e:2x2
jax: 0.10.0
libtpu: 0.0.40
codegen_flags: <defaults>
</compile_context>

<pallas_src>
import functools

import jax
import jax.numpy as jnp
from jax.experimental import pallas as pl
from jax.experimental.pallas import tpu as pltpu


# ----------------------------------------------------------------------------
# helpers
# ----------------------------------------------------------------------------
def _round_up(x, m):
    return (x + m - 1) // m * m


def _pick_tm(M, K, N, bytes_in, bytes_out, budget=8 * 1024 * 1024):
    """Largest M-tile (<=512) whose double-buffered footprint fits the budget."""
    tm = 512
    while tm > 8 and (2 * (tm * K * bytes_in + tm * N * bytes_out)
                      + 2 * K * N * bytes_in + N * 4) > budget:
        tm //= 2
    return min(tm, _round_up(M, 8))


# ----------------------------------------------------------------------------
# Pallas kernels
# ----------------------------------------------------------------------------
def _mm_bias_act_kernel(a_ref, b_ref, bias_ref, o_ref, *, relu):
    # bf16 x bf16 -> f32 accumulate; bias add + ReLU on the f32 accumulator.
    acc = jnp.dot(a_ref[...], b_ref[...], preferred_element_type=jnp.float32)
    acc = acc + bias_ref[...]
    if relu:
        acc = jnp.maximum(acc, 0.0)
    o_ref[...] = acc.astype(o_ref.dtype)


def matmul_bias_act(a, b, bias=None, relu=False, out_dtype=jnp.float32):
    """a:(M,K) @ b:(K,N) + bias(N,) [opt ReLU], tiled over M with pipelining."""
    M, K = a.shape
    K2, N = b.shape
    assert K == K2
    if bias is None:
        bias = jnp.zeros((N,), jnp.float32)
    bias2d = bias.reshape(1, N).astype(jnp.float32)

    tm = _pick_tm(M, K, N, a.dtype.itemsize, jnp.dtype(out_dtype).itemsize)
    Mp = _round_up(M, tm)
    if Mp != M:
        a = jnp.pad(a, ((0, Mp - M), (0, 0)))

    cost = pl.CostEstimate(
        flops=2 * Mp * N * K,
        transcendentals=0,
        bytes_accessed=(Mp * K * a.dtype.itemsize + K * N * b.dtype.itemsize
                        + N * 4 + Mp * N * jnp.dtype(out_dtype).itemsize),
    )

    out = pl.pallas_call(
        functools.partial(_mm_bias_act_kernel, relu=relu),
        out_shape=jax.ShapeDtypeStruct((Mp, N), out_dtype),
        grid=(Mp // tm,),
        in_specs=[
            pl.BlockSpec((tm, K), lambda i: (i, 0)),
            pl.BlockSpec((K, N), lambda i: (0, 0)),
            pl.BlockSpec((1, N), lambda i: (0, 0)),
        ],
        out_specs=pl.BlockSpec((tm, N), lambda i: (i, 0)),
        compiler_params=pltpu.CompilerParams(
            dimension_semantics=("parallel",),
            vmem_limit_bytes=32 * 1024 * 1024,
        ),
        cost_estimate=cost,
    )(a, b, bias2d)
    return out[:M] if Mp != M else out


def _bias_act_kernel(x_ref, bias_ref, o_ref, *, relu):
    y = x_ref[...].astype(jnp.float32) + bias_ref[...]
    if relu:
        y = jnp.maximum(y, 0.0)
    o_ref[...] = y.astype(o_ref.dtype)


def bias_act(x, bias, relu=False, out_dtype=jnp.float32):
    """Per-channel bias add (+ ReLU) on (M, C) rows, tiled over M."""
    M, N = x.shape
    bias2d = bias.reshape(1, N).astype(jnp.float32)
    tm = min(1024, _round_up(M, 8))
    Mp = _round_up(M, tm)
    if Mp != M:
        x = jnp.pad(x, ((0, Mp - M), (0, 0)))
    out = pl.pallas_call(
        functools.partial(_bias_act_kernel, relu=relu),
        out_shape=jax.ShapeDtypeStruct((Mp, N), out_dtype),
        grid=(Mp // tm,),
        in_specs=[
            pl.BlockSpec((tm, N), lambda i: (i, 0)),
            pl.BlockSpec((1, N), lambda i: (0, 0)),
        ],
        out_specs=pl.BlockSpec((tm, N), lambda i: (i, 0)),
        compiler_params=pltpu.CompilerParams(
            dimension_semantics=("parallel",),
            vmem_limit_bytes=32 * 1024 * 1024,
        ),
    )(x, bias2d)
    return out[:M] if Mp != M else out


def _latent_kernel(hf_ref, wmu_ref, bmu_ref, wlv_ref, blv_ref, eps_ref,
                   wdec_ref, bdec_ref, mu_ref, lv_ref, d_ref):
    """Fused fc_mu + fc_logvar + reparameterize + fc_decoder."""
    hf = hf_ref[...]
    mu = jnp.dot(hf, wmu_ref[...], preferred_element_type=jnp.float32) + bmu_ref[...]
    lv = jnp.dot(hf, wlv_ref[...], preferred_element_type=jnp.float32) + blv_ref[...]
    z = mu + eps_ref[...] * jnp.exp(0.5 * lv)           # EUP exp, f32
    d = jnp.dot(z, wdec_ref[...], preferred_element_type=jnp.float32) + bdec_ref[...]
    mu_ref[...] = mu
    lv_ref[...] = lv
    d_ref[...] = d.astype(d_ref.dtype)


def latent_fused(hf, eps, pp):
    B, flat = hf.shape
    latent = pp["w_mu"].shape[1]
    return pl.pallas_call(
        _latent_kernel,
        out_shape=(jax.ShapeDtypeStruct((B, latent), jnp.float32),
                   jax.ShapeDtypeStruct((B, latent), jnp.float32),
                   jax.ShapeDtypeStruct((B, flat), jnp.bfloat16)),
        grid=(1,),
        in_specs=[
            pl.BlockSpec((B, flat), lambda i: (0, 0)),
            pl.BlockSpec((flat, latent), lambda i: (0, 0)),
            pl.BlockSpec((1, latent), lambda i: (0, 0)),
            pl.BlockSpec((flat, latent), lambda i: (0, 0)),
            pl.BlockSpec((1, latent), lambda i: (0, 0)),
            pl.BlockSpec((B, latent), lambda i: (0, 0)),
            pl.BlockSpec((latent, flat), lambda i: (0, 0)),
            pl.BlockSpec((1, flat), lambda i: (0, 0)),
        ],
        out_specs=(
            pl.BlockSpec((B, latent), lambda i: (0, 0)),
            pl.BlockSpec((B, latent), lambda i: (0, 0)),
            pl.BlockSpec((B, flat), lambda i: (0, 0)),
        ),
        compiler_params=pltpu.CompilerParams(vmem_limit_bytes=32 * 1024 * 1024),
    )(hf, pp["w_mu"], pp["b_mu"], pp["w_lv"], pp["b_lv"], eps,
      pp["w_dec"], pp["b_dec"])


# ----------------------------------------------------------------------------
# Channels-last conv / conv_transpose built on the Pallas matmul
# ----------------------------------------------------------------------------
def _im2col_nhwc(x, k, stride, pad):
    B, H, W, C = x.shape
    if pad:
        x = jnp.pad(x, ((0, 0), (pad, pad), (pad, pad), (0, 0)))
    OH = (H + 2 * pad - k) // stride + 1
    OW = (W + 2 * pad - k) // stride + 1
    cols = []
    for kh in range(k):
        for kw in range(k):
            cols.append(x[:, kh:kh + stride * OH:stride, kw:kw + stride * OW:stride, :])
    p = jnp.stack(cols, axis=3)                       # (B, OH, OW, k*k, C)
    return p.reshape(B * OH * OW, k * k * C), OH, OW


def conv2d_nhwc(x, w_mat, b, k, stride, pad, relu, out_dtype):
    """x: (B,H,W,Cin) NHWC, w_mat: (k*k*Cin, Cout) prepped."""
    B = x.shape[0]
    Cout = w_mat.shape[1]
    patches, OH, OW = _im2col_nhwc(x, k, stride, pad)
    out = matmul_bias_act(patches, w_mat, b, relu=relu, out_dtype=out_dtype)
    return out.reshape(B, OH, OW, Cout)


def _valid_tap_range(n_in, n_out, stride, pad, kk):
    # valid i in [0, n_in) with 0 <= i*stride - pad + kk < n_out
    lo = max(0, -(-(pad - kk) // stride))
    hi = min(n_in - 1, (n_out - 1 + pad - kk) // stride)
    return lo, hi


def conv_transpose2d_nhwc(x, w_mat, b, k, stride, pad, out_pad, relu, out_dtype):
    """x: (B,H,W,Cin) NHWC, w_mat: (Cin, k*k*Cout) prepped.

    Dense matmul over the un-dilated input, then col2im scatter-add
    (out[i*s-p+kh, j*s-p+kw] += cols[i,j,kh,kw]) — no zero-dilation waste.
    """
    B, H, W, Cin = x.shape
    Cout = w_mat.shape[1] // (k * k)
    OH = (H - 1) * stride - 2 * pad + k + out_pad
    OW = (W - 1) * stride - 2 * pad + k + out_pad

    cols = matmul_bias_act(x.reshape(B * H * W, Cin), w_mat,
                           bias=None, relu=False, out_dtype=jnp.float32)
    cols = cols.reshape(B, H, W, k, k, Cout)

    out = jnp.zeros((B, OH, OW, Cout), jnp.float32)
    for kh in range(k):
        i_lo, i_hi = _valid_tap_range(H, OH, stride, pad, kh)
        if i_lo > i_hi:
            continue
        r_lo = i_lo * stride - pad + kh
        r_end = r_lo + (i_hi - i_lo) * stride + 1
        for kw in range(k):
            j_lo, j_hi = _valid_tap_range(W, OW, stride, pad, kw)
            if j_lo > j_hi:
                continue
            c_lo = j_lo * stride - pad + kw
            c_end = c_lo + (j_hi - j_lo) * stride + 1
            out = out.at[:, r_lo:r_end:stride, c_lo:c_end:stride, :].add(
                cols[:, i_lo:i_hi + 1, j_lo:j_hi + 1, kh, kw, :])

    out2d = bias_act(out.reshape(B * OH * OW, Cout), b, relu=relu, out_dtype=out_dtype)
    return out2d.reshape(B, OH, OW, Cout)


# ----------------------------------------------------------------------------
# Parameter prep (hoisted reshapes / transposes / bf16 casts — done once)
# ----------------------------------------------------------------------------
def prepare_params(p, k=3):
    def conv_mat(w):        # (Cout, Cin, k, k) -> (k*k*Cin, Cout), im2col order (kh,kw,ci)
        Cout, Cin = w.shape[:2]
        return w.transpose(2, 3, 1, 0).reshape(k * k * Cin, Cout).astype(jnp.bfloat16)

    def deconv_mat(w):      # (Cin, Cout, k, k) -> (Cin, k*k*Cout), col order (kh,kw,co)
        Cin, Cout = w.shape[:2]
        return w.transpose(0, 2, 3, 1).reshape(Cin, k * k * Cout).astype(jnp.bfloat16)

    return dict(
        conv1_m=conv_mat(p["conv1_w"]), conv1_b=p["conv1_b"].astype(jnp.float32),
        conv2_m=conv_mat(p["conv2_w"]), conv2_b=p["conv2_b"].astype(jnp.float32),
        w_mu=p["fc_mu_w"].T.astype(jnp.bfloat16),
        b_mu=p["fc_mu_b"].reshape(1, -1).astype(jnp.float32),
        w_lv=p["fc_lv_w"].T.astype(jnp.bfloat16),
        b_lv=p["fc_lv_b"].reshape(1, -1).astype(jnp.float32),
        w_dec=p["fc_dec_w"].T.astype(jnp.float32),
        b_dec=p["fc_dec_b"].reshape(1, -1).astype(jnp.float32),
        deconv1_m=deconv_mat(p["deconv1_w"]),
        deconv1_b=p["deconv1_b"].astype(jnp.float32),
        deconv2_m=deconv_mat(p["deconv2_w"]),
        deconv2_b=p["deconv2_b"].astype(jnp.float32),
    )


# ----------------------------------------------------------------------------
# ConvVAE forward (channels-last internally, NCHW at the model boundary)
# ----------------------------------------------------------------------------
def conv_vae_forward(pp, x, eps, last_size):
    B = x.shape[0]
    x = x.transpose(0, 2, 3, 1).astype(jnp.bfloat16)            # NCHW -> NHWC, bf16

    # encoder
    h = conv2d_nhwc(x, pp["conv1_m"], pp["conv1_b"], k=3, stride=2, pad=1,
                    relu=True, out_dtype=jnp.bfloat16)
    h = conv2d_nhwc(h, pp["conv2_m"], pp["conv2_b"], k=3, stride=2, pad=1,
                    relu=True, out_dtype=jnp.bfloat16)
    # nn.Flatten flattens NCHW (C,H,W) order; tiny transpose to match fc weights.
    hf = h.transpose(0, 3, 1, 2).reshape(B, -1)

    # fused latent path: mu / logvar / reparameterize / fc_decoder in one kernel
    mu, logvar, d = latent_fused(hf, eps, pp)

    # decoder
    d = d.reshape(B, 64, last_size, last_size).transpose(0, 2, 3, 1)   # -> NHWC
    d = conv_transpose2d_nhwc(d, pp["deconv1_m"], pp["deconv1_b"], k=3, stride=2,
                              pad=1, out_pad=1, relu=True, out_dtype=jnp.bfloat16)
    recon = conv_transpose2d_nhwc(d, pp["deconv2_m"], pp["deconv2_b"], k=3, stride=2,
                                  pad=1, out_pad=1, relu=False, out_dtype=jnp.float32)
    return recon.transpose(0, 3, 1, 2), mu, logvar                     # NCHW out


# ----------------------------------------------------------------------------
# Driver
# ----------------------------------------------------------------------------
if __name__ == "__main__":
    key = jax.random.PRNGKey(0)
    batch, input_size, latent_dim = 2, 16, 8
    last_size = input_size // 4                 # 4
    flat = 64 * last_size * last_size           # 1024

    ks = jax.random.split(key, 16)

    def init(k, shape, scale=0.05):
        return (scale * jax.random.normal(k, shape)).astype(jnp.float32)

    params = dict(
        conv1_w=init(ks[0], (32, 1, 3, 3)),
        conv1_b=init(ks[1], (32,)),
        conv2_w=init(ks[2], (64, 32, 3, 3)),
        conv2_b=init(ks[3], (64,)),
        fc_mu_w=init(ks[4], (latent_dim, flat)),
        fc_mu_b=init(ks[5], (latent_dim,)),
        fc_lv_w=init(ks[6], (latent_dim, flat)),
        fc_lv_b=init(ks[7], (latent_dim,)),
        fc_dec_w=init(ks[8], (flat, latent_dim)),
        fc_dec_b=init(ks[9], (flat,)),
        # ConvTranspose2d weight layout is (Cin, Cout, k, k)
        deconv1_w=init(ks[10], (64, 32, 3, 3)),
        deconv1_b=init(ks[11], (32,)),
        deconv2_w=init(ks[12], (32, 1, 3, 3)),
        deconv2_b=init(ks[13], (1,)),
    )

    pp = prepare_params(params)     # one-time weight prep (reshape/transpose/bf16)

    x = jax.random.normal(ks[14], (batch, 1, input_size, input_size), jnp.float32)
    # deterministic stand-in for torch.randn_like(std)
    eps = jax.random.normal(ks[15], (batch, latent_dim), jnp.float32)

    fwd = jax.jit(conv_vae_forward, static_argnums=(3,))
    recon, mu, logvar = fwd(pp, x, eps, last_size)
    jax.block_until_ready((recon, mu, logvar))

    assert recon.shape == (batch, 1, input_size, input_size), recon.shape
    assert mu.shape == (batch, latent_dim) and logvar.shape == (batch, latent_dim)
    assert bool(jnp.isfinite(recon).all()) and bool(jnp.isfinite(mu).all())
    print("KERNEL_OK")
</pallas_src>

<mosaic_0001>
module attributes {stable_mosaic.version = 11 : i64} {
  func.func @_mm_bias_act_kernel(%arg0: i32, %arg1: memref<128x9xbf16, #tpu.memory_space<vmem>>, %arg2: memref<9x32xbf16, #tpu.memory_space<vmem>>, %arg3: memref<1x32xf32, #tpu.memory_space<vmem>>, %arg4: memref<128x32xbf16, #tpu.memory_space<vmem>>) attributes {dimension_semantics = [#tpu.dimension_semantics<parallel>], iteration_bounds = array<i64: 1>, scalar_prefetch = 0 : i64, scratch_operands = 0 : i64, tpu.core_type = #tpu.core_type<tc>, window_params = [{transform_indices = @transform_0, window_bounds = array<i64: 128, 9>}, {pipeline_mode = #tpu.pipeline_mode<synchronous>, transform_indices = @transform_1, window_bounds = array<i64: 9, 32>}, {pipeline_mode = #tpu.pipeline_mode<synchronous>, transform_indices = @transform_2, window_bounds = array<i64: 1, 32>}, {transform_indices = @transform_3, window_bounds = array<i64: 128, 32>}]} {
    %c0 = arith.constant 0 : index
    %c0_0 = arith.constant 0 : index
    %0 = vector.load %arg1[%c0, %c0_0] : memref<128x9xbf16, #tpu.memory_space<vmem>>, vector<128x9xbf16>
    %c0_1 = arith.constant 0 : index
    %c0_2 = arith.constant 0 : index
    %1 = vector.load %arg2[%c0_1, %c0_2] : memref<9x32xbf16, #tpu.memory_space<vmem>>, vector<9x32xbf16>
    %cst = arith.constant dense<0.000000e+00> : vector<128x32xf32>
    %2 = tpu.matmul %0, %1, %cst {dimension_numbers = #tpu.dot_dimension_numbers<[1], [0], [0], [1], [0, 0, 1, 1], [], []>} : vector<128x9xbf16>, vector<9x32xbf16>, vector<128x32xf32> -> vector<128x32xf32>
    %c0_3 = arith.constant 0 : index
    %c0_4 = arith.constant 0 : index
    %3 = vector.load %arg3[%c0_3, %c0_4] : memref<1x32xf32, #tpu.memory_space<vmem>>, vector<1x32xf32>
    %4 = vector.broadcast %3 : vector<1x32xf32> to vector<128x32xf32>
    %5 = arith.addf %2, %4 : vector<128x32xf32>
    %cst_5 = arith.constant 0.000000e+00 : f32
    %6 = vector.broadcast %cst_5 : f32 to vector<128x32xf32>
    %7 = arith.maximumf %5, %6 : vector<128x32xf32>
    %8 = arith.truncf %7 : vector<128x32xf32> to vector<128x32xbf16>
    %c0_6 = arith.constant 0 : index
    %c0_7 = arith.constant 0 : index
    %9 = vector.load %arg4[%c0_6, %c0_7] : memref<128x32xbf16, #tpu.memory_space<vmem>>, vector<128x32xbf16>
    tpu.vector_store %arg4[%c0_6, %c0_7], %8 {strides = array<i32>} : memref<128x32xbf16, #tpu.memory_space<vmem>>, vector<128x32xbf16>,
    return
  }
  func.func @transform_0(%arg0: i32) -> (i32, i32) {
    %c0_i32 = arith.constant 0 : i32
    %c0_i32_0 = arith.constant 0 : i32
    return %arg0, %c0_i32 : i32, i32
  }
  func.func @transform_1(%arg0: i32) -> (i32, i32) {
    %c0_i32 = arith.constant 0 : i32
    %c0_i32_0 = arith.constant 0 : i32
    %c0_i32_1 = arith.constant 0 : i32
    return %c0_i32, %c0_i32_0 : i32, i32
  }
  func.func @transform_2(%arg0: i32) -> (i32, i32) {
    %c0_i32 = arith.constant 0 : i32
    %c0_i32_0 = arith.constant 0 : i32
    %c0_i32_1 = arith.constant 0 : i32
    return %c0_i32, %c0_i32_0 : i32, i32
  }
  func.func @transform_3(%arg0: i32) -> (i32, i32) {
    %c0_i32 = arith.constant 0 : i32
    %c0_i32_0 = arith.constant 0 : i32
    return %arg0, %c0_i32 : i32, i32
  }
}

module attributes {stable_mosaic.version = 11 : i64} {
  func.func @_mm_bias_act_kernel(%arg0: i32, %arg1: memref<32x288xbf16, #tpu.memory_space<vmem>>, %arg2: memref<288x64xbf16, #tpu.memory_space<vmem>>, %arg3: memref<1x64xf32, #tpu.memory_space<vmem>>, %arg4: memref<32x64xbf16, #tpu.memory_space<vmem>>) attributes {dimension_semantics = [#tpu.dimension_semantics<parallel>], iteration_bounds = array<i64: 1>, scalar_prefetch = 0 : i64, scratch_operands = 0 : i64, tpu.core_type = #tpu.core_type<tc>, window_params = [{transform_indices = @transform_0, window_bounds = array<i64: 32, 288>}, {pipeline_mode = #tpu.pipeline_mode<synchronous>, transform_indices = @transform_1, window_bounds = array<i64: 288, 64>}, {pipeline_mode = #tpu.pipeline_mode<synchronous>, transform_indices = @transform_2, window_bounds = array<i64: 1, 64>}, {transform_indices = @transform_3, window_bounds = array<i64: 32, 64>}]} {
    %c0 = arith.constant 0 : index
    %c0_0 = arith.constant 0 : index
    %0 = vector.load %arg1[%c0, %c0_0] : memref<32x288xbf16, #tpu.memory_space<vmem>>, vector<32x288xbf16>
    %c0_1 = arith.constant 0 : index
    %c0_2 = arith.constant 0 : index
    %1 = vector.load %arg2[%c0_1, %c0_2] : memref<288x64xbf16, #tpu.memory_space<vmem>>, vector<288x64xbf16>
    %cst = arith.constant dense<0.000000e+00> : vector<32x64xf32>
    %2 = tpu.matmul %0, %1, %cst {dimension_numbers = #tpu.dot_dimension_numbers<[1], [0], [0], [1], [0, 0, 1, 1], [], []>} : vector<32x288xbf16>, vector<288x64xbf16>, vector<32x64xf32> -> vector<32x64xf32>
    %c0_3 = arith.constant 0 : index
    %c0_4 = arith.constant 0 : index
    %3 = vector.load %arg3[%c0_3, %c0_4] : memref<1x64xf32, #tpu.memory_space<vmem>>, vector<1x64xf32>
    %4 = vector.broadcast %3 : vector<1x64xf32> to vector<32x64xf32>
    %5 = arith.addf %2, %4 : vector<32x64xf32>
    %cst_5 = arith.constant 0.000000e+00 : f32
    %6 = vector.broadcast %cst_5 : f32 to vector<32x64xf32>
    %7 = arith.maximumf %5, %6 : vector<32x64xf32>
    %8 = arith.truncf %7 : vector<32x64xf32> to vector<32x64xbf16>
    %c0_6 = arith.constant 0 : index
    %c0_7 = arith.constant 0 : index
    %9 = vector.load %arg4[%c0_6, %c0_7] : memref<32x64xbf16, #tpu.memory_space<vmem>>, vector<32x64xbf16>
    tpu.vector_store %arg4[%c0_6, %c0_7], %8 {strides = array<i32>} : memref<32x64xbf16, #tpu.memory_space<vmem>>, vector<32x64xbf16>,
    return
  }
  func.func @transform_0(%arg0: i32) -> (i32, i32) {
    %c0_i32 = arith.constant 0 : i32
    %c0_i32_0 = arith.constant 0 : i32
    return %arg0, %c0_i32 : i32, i32
  }
  func.func @transform_1(%arg0: i32) -> (i32, i32) {
    %c0_i32 = arith.constant 0 : i32
    %c0_i32_0 = arith.constant 0 : i32
    %c0_i32_1 = arith.constant 0 : i32
    return %c0_i32, %c0_i32_0 : i32, i32
  }
  func.func @transform_2(%arg0: i32) -> (i32, i32) {
    %c0_i32 = arith.constant 0 : i32
    %c0_i32_0 = arith.constant 0 : i32
    %c0_i32_1 = arith.constant 0 : i32
    return %c0_i32, %c0_i32_0 : i32, i32
  }
  func.func @transform_3(%arg0: i32) -> (i32, i32) {
    %c0_i32 = arith.constant 0 : i32
    %c0_i32_0 = arith.constant 0 : i32
    return %arg0, %c0_i32 : i32, i32
  }
}

module attributes {stable_mosaic.version = 11 : i64} {
  func.func @_latent_kernel(%arg0: i32, %arg1: memref<2x1024xbf16, #tpu.memory_space<vmem>>, %arg2: memref<1024x8xbf16, #tpu.memory_space<vmem>>, %arg3: memref<1x8xf32, #tpu.memory_space<vmem>>, %arg4: memref<1024x8xbf16, #tpu.memory_space<vmem>>, %arg5: memref<1x8xf32, #tpu.memory_space<vmem>>, %arg6: memref<2x8xf32, #tpu.memory_space<vmem>>, %arg7: memref<8x1024xf32, #tpu.memory_space<vmem>>, %arg8: memref<1x1024xf32, #tpu.memory_space<vmem>>, %arg9: memref<2x8xf32, #tpu.memory_space<vmem>>, %arg10: memref<2x8xf32, #tpu.memory_space<vmem>>, %arg11: memref<2x1024xbf16, #tpu.memory_space<vmem>>) attributes {dimension_semantics = [#tpu.dimension_semantics<arbitrary>], iteration_bounds = array<i64: 1>, scalar_prefetch = 0 : i64, scratch_operands = 0 : i64, tpu.core_type = #tpu.core_type<tc>, window_params = [{pipeline_mode = #tpu.pipeline_mode<synchronous>, transform_indices = @transform_0, window_bounds = array<i64: 2, 1024>}, {pipeline_mode = #tpu.pipeline_mode<synchronous>, transform_indices = @transform_1, window_bounds = array<i64: 1024, 8>}, {pipeline_mode = #tpu.pipeline_mode<synchronous>, transform_indices = @transform_2, window_bounds = array<i64: 1, 8>}, {pipeline_mode = #tpu.pipeline_mode<synchronous>, transform_indices = @transform_3, window_bounds = array<i64: 1024, 8>}, {pipeline_mode = #tpu.pipeline_mode<synchronous>, transform_indices = @transform_4, window_bounds = array<i64: 1, 8>}, {pipeline_mode = #tpu.pipeline_mode<synchronous>, transform_indices = @transform_5, window_bounds = array<i64: 2, 8>}, {pipeline_mode = #tpu.pipeline_mode<synchronous>, transform_indices = @transform_6, window_bounds = array<i64: 8, 1024>}, {pipeline_mode = #tpu.pipeline_mode<synchronous>, transform_indices = @transform_7, window_bounds = array<i64: 1, 1024>}, {pipeline_mode = #tpu.pipeline_mode<synchronous>, transform_indices = @transform_8, window_bounds = array<i64: 2, 8>}, {pipeline_mode = #tpu.pipeline_mode<synchronous>, transform_indices = @transform_9, window_bounds = array<i64: 2, 8>}, {pipeline_mode = #tpu.pipeline_mode<synchronous>, transform_indices = @transform_10, window_bounds = array<i64: 2, 1024>}]} {
    %c0 = arith.constant 0 : index
    %c0_0 = arith.constant 0 : index
    %0 = vector.load %arg1[%c0, %c0_0] : memref<2x1024xbf16, #tpu.memory_space<vmem>>, vector<2x1024xbf16>
    %c0_1 = arith.constant 0 : index
    %c0_2 = arith.constant 0 : index
    %1 = vector.load %arg2[%c0_1, %c0_2] : memref<1024x8xbf16, #tpu.memory_space<vmem>>, vector<1024x8xbf16>
    %cst = arith.constant dense<0.000000e+00> : vector<2x8xf32>
    %2 = tpu.matmul %0, %1, %cst {dimension_numbers = #tpu.dot_dimension_numbers<[1], [0], [0], [1], [0, 0, 1, 1], [], []>} : vector<2x1024xbf16>, vector<1024x8xbf16>, vector<2x8xf32> -> vector<2x8xf32>
    %c0_3 = arith.constant 0 : index
    %c0_4 = arith.constant 0 : index
    %3 = vector.load %arg3[%c0_3, %c0_4] : memref<1x8xf32, #tpu.memory_space<vmem>>, vector<1x8xf32>
    %4 = vector.broadcast %3 : vector<1x8xf32> to vector<2x8xf32>
    %5 = arith.addf %2, %4 : vector<2x8xf32>
    %c0_5 = arith.constant 0 : index
    %c0_6 = arith.constant 0 : index
    %6 = vector.load %arg4[%c0_5, %c0_6] : memref<1024x8xbf16, #tpu.memory_space<vmem>>, vector<1024x8xbf16>
    %cst_7 = arith.constant dense<0.000000e+00> : vector<2x8xf32>
    %7 = tpu.matmul %0, %6, %cst_7 {dimension_numbers = #tpu.dot_dimension_numbers<[1], [0], [0], [1], [0, 0, 1, 1], [], []>} : vector<2x1024xbf16>, vector<1024x8xbf16>, vector<2x8xf32> -> vector<2x8xf32>
    %c0_8 = arith.constant 0 : index
    %c0_9 = arith.constant 0 : index
    %8 = vector.load %arg5[%c0_8, %c0_9] : memref<1x8xf32, #tpu.memory_space<vmem>>, vector<1x8xf32>
    %9 = vector.broadcast %8 : vector<1x8xf32> to vector<2x8xf32>
    %10 = arith.addf %7, %9 : vector<2x8xf32>
    %c0_10 = arith.constant 0 : index
    %c0_11 = arith.constant 0 : index
    %11 = vector.load %arg6[%c0_10, %c0_11] : memref<2x8xf32, #tpu.memory_space<vmem>>, vector<2x8xf32>
    %cst_12 = arith.constant 5.000000e-01 : f32
    %12 = vector.broadcast %cst_12 : f32 to vector<2x8xf32>
    %13 = arith.mulf %12, %10 : vector<2x8xf32>
    %14 = math.exp %13 : vector<2x8xf32>
    %15 = arith.mulf %11, %14 : vector<2x8xf32>
    %16 = arith.addf %5, %15 : vector<2x8xf32>
    %c0_13 = arith.constant 0 : index
    %c0_14 = arith.constant 0 : index
    %17 = vector.load %arg7[%c0_13, %c0_14] : memref<8x1024xf32, #tpu.memory_space<vmem>>, vector<8x1024xf32>
    %cst_15 = arith.constant dense<0.000000e+00> : vector<2x1024xf32>
    %18 = tpu.matmul %16, %17, %cst_15 {dimension_numbers = #tpu.dot_dimension_numbers<[1], [0], [0], [1], [0, 0, 1, 1], [], []>} : vector<2x8xf32>, vector<8x1024xf32>, vector<2x1024xf32> -> vector<2x1024xf32>
    %c0_16 = arith.constant 0 : index
    %c0_17 = arith.constant 0 : index
    %19 = vector.load %arg8[%c0_16, %c0_17] : memref<1x1024xf32, #tpu.memory_space<vmem>>, vector<1x1024xf32>
    %20 = vector.broadcast %19 : vector<1x1024xf32> to vector<2x1024xf32>
    %21 = arith.addf %18, %20 : vector<2x1024xf32>
    %c0_18 = arith.constant 0 : index
    %c0_19 = arith.constant 0 : index
    %22 = vector.load %arg9[%c0_18, %c0_19] : memref<2x8xf32, #tpu.memory_space<vmem>>, vector<2x8xf32>
    tpu.vector_store %arg9[%c0_18, %c0_19], %5 {strides = array<i32>} : memref<2x8xf32, #tpu.memory_space<vmem>>, vector<2x8xf32>,
    %c0_20 = arith.constant 0 : index
    %c0_21 = arith.constant 0 : index
    %23 = vector.load %arg10[%c0_20, %c0_21] : memref<2x8xf32, #tpu.memory_space<vmem>>, vector<2x8xf32>
    tpu.vector_store %arg10[%c0_20, %c0_21], %10 {strides = array<i32>} : memref<2x8xf32, #tpu.memory_space<vmem>>, vector<2x8xf32>,
    %24 = arith.truncf %21 : vector<2x1024xf32> to vector<2x1024xbf16>
    %c0_22 = arith.constant 0 : index
    %c0_23 = arith.constant 0 : index
    %25 = vector.load %arg11[%c0_22, %c0_23] : memref<2x1024xbf16, #tpu.memory_space<vmem>>, vector<2x1024xbf16>
    tpu.vector_store %arg11[%c0_22, %c0_23], %24 {strides = array<i32>} : memref<2x1024xbf16, #tpu.memory_space<vmem>>, vector<2x1024xbf16>,
    return
  }
  func.func @transform_0(%arg0: i32) -> (i32, i32) {
    %c0_i32 = arith.constant 0 : i32
    %c0_i32_0 = arith.constant 0 : i32
    %c0_i32_1 = arith.constant 0 : i32
    return %c0_i32, %c0_i32_0 : i32, i32
  }
  func.func @transform_1(%arg0: i32) -> (i32, i32) {
    %c0_i32 = arith.constant 0 : i32
    %c0_i32_0 = arith.constant 0 : i32
    %c0_i32_1 = arith.constant 0 : i32
    return %c0_i32, %c0_i32_0 : i32, i32
  }
  func.func @transform_2(%arg0: i32) -> (i32, i32) {
    %c0_i32 = arith.constant 0 : i32
    %c0_i32_0 = arith.constant 0 : i32
    %c0_i32_1 = arith.constant 0 : i32
    return %c0_i32, %c0_i32_0 : i32, i32
  }
  func.func @transform_3(%arg0: i32) -> (i32, i32) {
    %c0_i32 = arith.constant 0 : i32
    %c0_i32_0 = arith.constant 0 : i32
    %c0_i32_1 = arith.constant 0 : i32
    return %c0_i32, %c0_i32_0 : i32, i32
  }
  func.func @transform_4(%arg0: i32) -> (i32, i32) {
    %c0_i32 = arith.constant 0 : i32
    %c0_i32_0 = arith.constant 0 : i32
    %c0_i32_1 = arith.constant 0 : i32
    return %c0_i32, %c0_i32_0 : i32, i32
  }
  func.func @transform_5(%arg0: i32) -> (i32, i32) {
    %c0_i32 = arith.constant 0 : i32
    %c0_i32_0 = arith.constant 0 : i32
    %c0_i32_1 = arith.constant 0 : i32
    return %c0_i32, %c0_i32_0 : i32, i32
  }
  func.func @transform_6(%arg0: i32) -> (i32, i32) {
    %c0_i32 = arith.constant 0 : i32
    %c0_i32_0 = arith.constant 0 : i32
    %c0_i32_1 = arith.constant 0 : i32
    return %c0_i32, %c0_i32_0 : i32, i32
  }
  func.func @transform_7(%arg0: i32) -> (i32, i32) {
    %c0_i32 = arith.constant 0 : i32
    %c0_i32_0 = arith.constant 0 : i32
    %c0_i32_1 = arith.constant 0 : i32
    return %c0_i32, %c0_i32_0 : i32, i32
  }
  func.func @transform_8(%arg0: i32) -> (i32, i32) {
    %c0_i32 = arith.constant 0 : i32
    %c0_i32_0 = arith.constant 0 : i32
    %c0_i32_1 = arith.constant 0 : i32
    return %c0_i32, %c0_i32_0 : i32, i32
  }
  func.func @transform_9(%arg0: i32) -> (i32, i32) {
    %c0_i32 = arith.constant 0 : i32
    %c0_i32_0 = arith.constant 0 : i32
    %c0_i32_1 = arith.constant 0 : i32
    return %c0_i32, %c0_i32_0 : i32, i32
  }
  func.func @transform_10(%arg0: i32) -> (i32, i32) {
    %c0_i32 = arith.constant 0 : i32
    %c0_i32_0 = arith.constant 0 : i32
    %c0_i32_1 = arith.constant 0 : i32
    return %c0_i32, %c0_i32_0 : i32, i32
  }
}

module attributes {stable_mosaic.version = 11 : i64} {
  func.func @_mm_bias_act_kernel(%arg0: i32, %arg1: memref<32x64xbf16, #tpu.memory_space<vmem>>, %arg2: memref<64x288xbf16, #tpu.memory_space<vmem>>, %arg3: memref<1x288xf32, #tpu.memory_space<vmem>>, %arg4: memref<32x288xf32, #tpu.memory_space<vmem>>) attributes {dimension_semantics = [#tpu.dimension_semantics<parallel>], iteration_bounds = array<i64: 1>, scalar_prefetch = 0 : i64, scratch_operands = 0 : i64, tpu.core_type = #tpu.core_type<tc>, window_params = [{transform_indices = @transform_0, window_bounds = array<i64: 32, 64>}, {pipeline_mode = #tpu.pipeline_mode<synchronous>, transform_indices = @transform_1, window_bounds = array<i64: 64, 288>}, {pipeline_mode = #tpu.pipeline_mode<synchronous>, transform_indices = @transform_2, window_bounds = array<i64: 1, 288>}, {transform_indices = @transform_3, window_bounds = array<i64: 32, 288>}]} {
    %c0 = arith.constant 0 : index
    %c0_0 = arith.constant 0 : index
    %0 = vector.load %arg1[%c0, %c0_0] : memref<32x64xbf16, #tpu.memory_space<vmem>>, vector<32x64xbf16>
    %c0_1 = arith.constant 0 : index
    %c0_2 = arith.constant 0 : index
    %1 = vector.load %arg2[%c0_1, %c0_2] : memref<64x288xbf16, #tpu.memory_space<vmem>>, vector<64x288xbf16>
    %cst = arith.constant dense<0.000000e+00> : vector<32x288xf32>
    %2 = tpu.matmul %0, %1, %cst {dimension_numbers = #tpu.dot_dimension_numbers<[1], [0], [0], [1], [0, 0, 1, 1], [], []>} : vector<32x64xbf16>, vector<64x288xbf16>, vector<32x288xf32> -> vector<32x288xf32>
    %c0_3 = arith.constant 0 : index
    %c0_4 = arith.constant 0 : index
    %3 = vector.load %arg3[%c0_3, %c0_4] : memref<1x288xf32, #tpu.memory_space<vmem>>, vector<1x288xf32>
    %4 = vector.broadcast %3 : vector<1x288xf32> to vector<32x288xf32>
    %5 = arith.addf %2, %4 : vector<32x288xf32>
    %c0_5 = arith.constant 0 : index
    %c0_6 = arith.constant 0 : index
    %6 = vector.load %arg4[%c0_5, %c0_6] : memref<32x288xf32, #tpu.memory_space<vmem>>, vector<32x288xf32>
    tpu.vector_store %arg4[%c0_5, %c0_6], %5 {strides = array<i32>} : memref<32x288xf32, #tpu.memory_space<vmem>>, vector<32x288xf32>,
    return
  }
  func.func @transform_0(%arg0: i32) -> (i32, i32) {
    %c0_i32 = arith.constant 0 : i32
    %c0_i32_0 = arith.constant 0 : i32
    return %arg0, %c0_i32 : i32, i32
  }
  func.func @transform_1(%arg0: i32) -> (i32, i32) {
    %c0_i32 = arith.constant 0 : i32
    %c0_i32_0 = arith.constant 0 : i32
    %c0_i32_1 = arith.constant 0 : i32
    return %c0_i32, %c0_i32_0 : i32, i32
  }
  func.func @transform_2(%arg0: i32) -> (i32, i32) {
    %c0_i32 = arith.constant 0 : i32
    %c0_i32_0 = arith.constant 0 : i32
    %c0_i32_1 = arith.constant 0 : i32
    return %c0_i32, %c0_i32_0 : i32, i32
  }
  func.func @transform_3(%arg0: i32) -> (i32, i32) {
    %c0_i32 = arith.constant 0 : i32
    %c0_i32_0 = arith.constant 0 : i32
    return %arg0, %c0_i32 : i32, i32
  }
}

module attributes {stable_mosaic.version = 11 : i64} {
  func.func @_bias_act_kernel(%arg0: i32, %arg1: memref<128x32xf32, #tpu.memory_space<vmem>>, %arg2: memref<1x32xf32, #tpu.memory_space<vmem>>, %arg3: memref<128x32xbf16, #tpu.memory_space<vmem>>) attributes {dimension_semantics = [#tpu.dimension_semantics<parallel>], iteration_bounds = array<i64: 1>, scalar_prefetch = 0 : i64, scratch_operands = 0 : i64, tpu.core_type = #tpu.core_type<tc>, window_params = [{transform_indices = @transform_0, window_bounds = array<i64: 128, 32>}, {pipeline_mode = #tpu.pipeline_mode<synchronous>, transform_indices = @transform_1, window_bounds = array<i64: 1, 32>}, {transform_indices = @transform_2, window_bounds = array<i64: 128, 32>}]} {
    %c0 = arith.constant 0 : index
    %c0_0 = arith.constant 0 : index
    %0 = vector.load %arg1[%c0, %c0_0] : memref<128x32xf32, #tpu.memory_space<vmem>>, vector<128x32xf32>
    %c0_1 = arith.constant 0 : index
    %c0_2 = arith.constant 0 : index
    %1 = vector.load %arg2[%c0_1, %c0_2] : memref<1x32xf32, #tpu.memory_space<vmem>>, vector<1x32xf32>
    %2 = vector.broadcast %1 : vector<1x32xf32> to vector<128x32xf32>
    %3 = arith.addf %0, %2 : vector<128x32xf32>
    %cst = arith.constant 0.000000e+00 : f32
    %4 = vector.broadcast %cst : f32 to vector<128x32xf32>
    %5 = arith.maximumf %3, %4 : vector<128x32xf32>
    %6 = arith.truncf %5 : vector<128x32xf32> to vector<128x32xbf16>
    %c0_3 = arith.constant 0 : index
    %c0_4 = arith.constant 0 : index
    %7 = vector.load %arg3[%c0_3, %c0_4] : memref<128x32xbf16, #tpu.memory_space<vmem>>, vector<128x32xbf16>
    tpu.vector_store %arg3[%c0_3, %c0_4], %6 {strides = array<i32>} : memref<128x32xbf16, #tpu.memory_space<vmem>>, vector<128x32xbf16>,
    return
  }
  func.func @transform_0(%arg0: i32) -> (i32, i32) {
    %c0_i32 = arith.constant 0 : i32
    %c0_i32_0 = arith.constant 0 : i32
    return %arg0, %c0_i32 : i32, i32
  }
  func.func @transform_1(%arg0: i32) -> (i32, i32) {
    %c0_i32 = arith.constant 0 : i32
    %c0_i32_0 = arith.constant 0 : i32
    %c0_i32_1 = arith.constant 0 : i32
    return %c0_i32, %c0_i32_0 : i32, i32
  }
  func.func @transform_2(%arg0: i32) -> (i32, i32) {
    %c0_i32 = arith.constant 0 : i32
    %c0_i32_0 = arith.constant 0 : i32
    return %arg0, %c0_i32 : i32, i32
  }
}

module attributes {stable_mosaic.version = 11 : i64} {
  func.func @_mm_bias_act_kernel(%arg0: i32, %arg1: memref<128x32xbf16, #tpu.memory_space<vmem>>, %arg2: memref<32x9xbf16, #tpu.memory_space<vmem>>, %arg3: memref<1x9xf32, #tpu.memory_space<vmem>>, %arg4: memref<128x9xf32, #tpu.memory_space<vmem>>) attributes {dimension_semantics = [#tpu.dimension_semantics<parallel>], iteration_bounds = array<i64: 1>, scalar_prefetch = 0 : i64, scratch_operands = 0 : i64, tpu.core_type = #tpu.core_type<tc>, window_params = [{transform_indices = @transform_0, window_bounds = array<i64: 128, 32>}, {pipeline_mode = #tpu.pipeline_mode<synchronous>, transform_indices = @transform_1, window_bounds = array<i64: 32, 9>}, {pipeline_mode = #tpu.pipeline_mode<synchronous>, transform_indices = @transform_2, window_bounds = array<i64: 1, 9>}, {transform_indices = @transform_3, window_bounds = array<i64: 128, 9>}]} {
    %c0 = arith.constant 0 : index
    %c0_0 = arith.constant 0 : index
    %0 = vector.load %arg1[%c0, %c0_0] : memref<128x32xbf16, #tpu.memory_space<vmem>>, vector<128x32xbf16>
    %c0_1 = arith.constant 0 : index
    %c0_2 = arith.constant 0 : index
    %1 = vector.load %arg2[%c0_1, %c0_2] : memref<32x9xbf16, #tpu.memory_space<vmem>>, vector<32x9xbf16>
    %cst = arith.constant dense<0.000000e+00> : vector<128x9xf32>
    %2 = tpu.matmul %0, %1, %cst {dimension_numbers = #tpu.dot_dimension_numbers<[1], [0], [0], [1], [0, 0, 1, 1], [], []>} : vector<128x32xbf16>, vector<32x9xbf16>, vector<128x9xf32> -> vector<128x9xf32>
    %c0_3 = arith.constant 0 : index
    %c0_4 = arith.constant 0 : index
    %3 = vector.load %arg3[%c0_3, %c0_4] : memref<1x9xf32, #tpu.memory_space<vmem>>, vector<1x9xf32>
    %4 = vector.broadcast %3 : vector<1x9xf32> to vector<128x9xf32>
    %5 = arith.addf %2, %4 : vector<128x9xf32>
    %c0_5 = arith.constant 0 : index
    %c0_6 = arith.constant 0 : index
    %6 = vector.load %arg4[%c0_5, %c0_6] : memref<128x9xf32, #tpu.memory_space<vmem>>, vector<128x9xf32>
    tpu.vector_store %arg4[%c0_5, %c0_6], %5 {strides = array<i32>} : memref<128x9xf32, #tpu.memory_space<vmem>>, vector<128x9xf32>,
    return
  }
  func.func @transform_0(%arg0: i32) -> (i32, i32) {
    %c0_i32 = arith.constant 0 : i32
    %c0_i32_0 = arith.constant 0 : i32
    return %arg0, %c0_i32 : i32, i32
  }
  func.func @transform_1(%arg0: i32) -> (i32, i32) {
    %c0_i32 = arith.constant 0 : i32
    %c0_i32_0 = arith.constant 0 : i32
    %c0_i32_1 = arith.constant 0 : i32
    return %c0_i32, %c0_i32_0 : i32, i32
  }
  func.func @transform_2(%arg0: i32) -> (i32, i32) {
    %c0_i32 = arith.constant 0 : i32
    %c0_i32_0 = arith.constant 0 : i32
    %c0_i32_1 = arith.constant 0 : i32
    return %c0_i32, %c0_i32_0 : i32, i32
  }
  func.func @transform_3(%arg0: i32) -> (i32, i32) {
    %c0_i32 = arith.constant 0 : i32
    %c0_i32_0 = arith.constant 0 : i32
    return %arg0, %c0_i32 : i32, i32
  }
}

module attributes {stable_mosaic.version = 11 : i64} {
  func.func @_bias_act_kernel(%arg0: i32, %arg1: memref<512x1xf32, #tpu.memory_space<vmem>>, %arg2: memref<1x1xf32, #tpu.memory_space<vmem>>, %arg3: memref<512x1xf32, #tpu.memory_space<vmem>>) attributes {dimension_semantics = [#tpu.dimension_semantics<parallel>], iteration_bounds = array<i64: 1>, scalar_prefetch = 0 : i64, scratch_operands = 0 : i64, tpu.core_type = #tpu.core_type<tc>, window_params = [{transform_indices = @transform_0, window_bounds = array<i64: 512, 1>}, {pipeline_mode = #tpu.pipeline_mode<synchronous>, transform_indices = @transform_1, window_bounds = array<i64: 1, 1>}, {transform_indices = @transform_2, window_bounds = array<i64: 512, 1>}]} {
    %c0 = arith.constant 0 : index
    %c0_0 = arith.constant 0 : index
    %0 = vector.load %arg1[%c0, %c0_0] : memref<512x1xf32, #tpu.memory_space<vmem>>, vector<512x1xf32>
    %c0_1 = arith.constant 0 : index
    %c0_2 = arith.constant 0 : index
    %1 = vector.load %arg2[%c0_1, %c0_2] : memref<1x1xf32, #tpu.memory_space<vmem>>, vector<1x1xf32>
    %2 = vector.broadcast %1 : vector<1x1xf32> to vector<512x1xf32>
    %3 = arith.addf %0, %2 : vector<512x1xf32>
    %c0_3 = arith.constant 0 : index
    %c0_4 = arith.constant 0 : index
    %4 = vector.load %arg3[%c0_3, %c0_4] : memref<512x1xf32, #tpu.memory_space<vmem>>, vector<512x1xf32>
    tpu.vector_store %arg3[%c0_3, %c0_4], %3 {strides = array<i32>} : memref<512x1xf32, #tpu.memory_space<vmem>>, vector<512x1xf32>,
    return
  }
  func.func @transform_0(%arg0: i32) -> (i32, i32) {
    %c0_i32 = arith.constant 0 : i32
    %c0_i32_0 = arith.constant 0 : i32
    return %arg0, %c0_i32 : i32, i32
  }
  func.func @transform_1(%arg0: i32) -> (i32, i32) {
    %c0_i32 = arith.constant 0 : i32
    %c0_i32_0 = arith.constant 0 : i32
    %c0_i32_1 = arith.constant 0 : i32
    return %c0_i32, %c0_i32_0 : i32, i32
  }
  func.func @transform_2(%arg0: i32) -> (i32, i32) {
    %c0_i32 = arith.constant 0 : i32
    %c0_i32_0 = arith.constant 0 : i32
    return %arg0, %c0_i32 : i32, i32
  }
}

</mosaic_0001>

<bundles_post_ra>
// kernel: conv_vae_forward.7
= control target key start
LH: loop header
LB: loop body
LE: loop exit
PB: predicated region body
PF: predicated region fallthrough
CT: control target
= control target key end

     0   :  { %vm107_vm0 = vcmask 1043456   ;;  %vm108_vm1 = vcmask 1044480   ;;  %v274_v2 = vmov 65535   ;;  %vm82_vm2 = vcmask 72704   ;;  %s418_s1 = inlined_call_operand.vmem [shape: bf16[9,32], index: 1, kind: input, shape index: {}]   ;;  %s419_s0 = inlined_call_operand.vmem [shape: bf16[128,9], index: 0, kind: input, shape index: {}]   ;;  %s420_s2 = inlined_call_operand.vmem [shape: f32[1,32], index: 2, kind: input, shape index: {}]   ;;  %s421_s3 = inlined_call_operand.vmem [shape: bf16[128,32], index: 3, kind: output, shape index: {}]  }
   0x1   :  { %v250_v0 = vld [vmem:[%s418_s1] sm:$0xf]  ;;  %v268_v1 = vld [vmem:[%s418_s1] sm:$0x10]  ;;  %v109_v3 = vsel %vm107_vm0, 4294967295, %v274_v2  ;;  %v262_v8 = vld [vmem:[%s419_s0 + $0x10] sm:$0xff] }
   0x2   :  { %v251_v4 = vor.u32 %v268_v1, %v250_v0  ;;  %v110_v5 = vsel %vm108_vm1, %v109_v3, 0  ;;  %v260_v7 = vld [vmem:[%s419_s0] sm:$0xff]  ;;  %v266_v10 = vld [vmem:[%s419_s0 + $0x30] sm:$0xff]  ;;  %v261_v11 = vld [vmem:[%s419_s0 + $0x8] sm:$0xff]  ;;  %vm195_vm3 = vcmask 257024  }
   0x3   :  { %v264_v9 = vld [vmem:[%s419_s0 + $0x20] sm:$0xff]  ;;  %v263_v12 = vld [vmem:[%s419_s0 + $0x18] sm:$0xff]  ;;  %v265_v13 = vld [vmem:[%s419_s0 + $0x28] sm:$0xff] }
   0x4   :  { %v112_v6 = vand.u32 %v251_v4, %v110_v5  ;;  %v267_v14 = vld [vmem:[%s419_s0 + $0x38] sm:$0xff]  ;;  %v336_v15 = vld [vmem:[%s420_s2] ss:$0 sm:$0xff] }
   0x6   :  { %121 = vmatpush.bf16.msra.mxu0 %v112_v6  ;;  %269 = vmatpush.bf16.msra.mxu1 %v112_v6 }
   0x7   :  { %270 = vmatpush.bf16.msra.mxu2 %v112_v6  ;;  %271 = vmatpush.bf16.msra.mxu3 %v112_v6 }
   0x9   :  { %252 = vmatmul.msk.bf16.vlgmr.msra.gmra.mxu0 %vm82_vm2, %v260_v7  ;;  %254 = vmatmul.msk.bf16.vlgmr.msra.gmra.mxu1 %vm82_vm2, %v262_v8 }
   0xa   :  { %256 = vmatmul.msk.bf16.vlgmr.msra.gmra.mxu2 %vm82_vm2, %v264_v9  ;;  %258 = vmatmul.msk.bf16.vlgmr.msra.gmra.mxu3 %vm82_vm2, %v266_v10 }
  0x19   :  { %253 = vmatmul.msk.bf16.gmra.mxu0 %vm82_vm2, %v261_v11  ;;  %255 = vmatmul.msk.bf16.gmra.mxu1 %vm82_vm2, %v263_v12 }
  0x1a   :  { %257 = vmatmul.msk.bf16.gmra.mxu2 %vm82_vm2, %v265_v13  ;;  %259 = vmatmul.msk.bf16.gmra.mxu3 %vm82_vm2, %v267_v14 }
  0x86   :  { %v123_v16 = vpop.f32.mrf.mxu0  ;;  %v133_v17 = vpop.f32.mrf.mxu1 }
  0x87   :  { %v124_v18 = vadd.f32 %v336_v15, %v123_v16  ;;  %v134_v19 = vadd.f32 %v336_v15, %v133_v17 }
  0x89   :  { %v163_v20 = vmax.f32 %v124_v18, 0.0  ;;  %v167_v21 = vmax.f32 %v134_v19, 0.0 }
  0x8b   :  { %v179_v22 = vpack.c.bf16 %v163_v20, %v163_v20  ;;  %v183_v23 = vpack.c.bf16 %v167_v21, %v167_v21 }
  0x8d   :  { %196 = vst.msk [vmem:[%s421_s3] sm:$0xf] %vm195_vm3, %v179_v22  ;;  %v143_v24 = vpop.f32.mrf.mxu2  ;;  %v153_v25 = vpop.f32.mrf.mxu3 }
  0x8e   :  { %200 = vst.msk [vmem:[%s421_s3 + $0x10] sm:$0xf] %vm195_vm3, %v183_v23  ;;  %v144_v26 = vadd.f32 %v336_v15, %v143_v24  ;;  %v154_v27 = vadd.f32 %v336_v15, %v153_v25  ;;  %v125_v28 = vpop.f32.mrf.mxu0  ;;  %v135_v29 = vpop.f32.mrf.mxu1 }
  0x8f   :  { %v126_v30 = vadd.f32 %v336_v15, %v125_v28  ;;  %v136_v31 = vadd.f32 %v336_v15, %v135_v29 }
  0x90   :  { %v171_v32 = vmax.f32 %v144_v26, 0.0  ;;  %v175_v33 = vmax.f32 %v154_v27, 0.0 }
  0x91   :  { %v164_v34 = vmax.f32 %v126_v30, 0.0  ;;  %v168_v35 = vmax.f32 %v136_v31, 0.0 }
  0x92   :  { %v187_v36 = vpack.c.bf16 %v171_v32, %v171_v32  ;;  %v191_v37 = vpack.c.bf16 %v175_v33, %v175_v33 }
  0x93   :  { %v180_v38 = vpack.c.bf16 %v164_v34, %v164_v34  ;;  %v184_v39 = vpack.c.bf16 %v168_v35, %v168_v35 }
  0x94   :  { %204 = vst.msk [vmem:[%s421_s3 + $0x20] sm:$0xf] %vm195_vm3, %v187_v36 }
  0x95   :  { %208 = vst.msk [vmem:[%s421_s3 + $0x30] sm:$0xf] %vm195_vm3, %v191_v37  ;;  %v145_v40 = vpop.f32.mrf.mxu2  ;;  %v155_v41 = vpop.f32.mrf.mxu3 }
  0x96   :  { %197 = vst.msk [vmem:[%s421_s3 + $0x4] sm:$0xf] %vm195_vm3, %v180_v38  ;;  %v146_v42 = vadd.f32 %v336_v15, %v145_v40  ;;  %v156_v43 = vadd.f32 %v336_v15, %v155_v41  ;;  %v128_v44 = vpop.f32.mrf.mxu0  ;;  %v138_v45 = vpop.f32.mrf.mxu1 }
  0x97   :  { %201 = vst.msk [vmem:[%s421_s3 + $0x14] sm:$0xf] %vm195_vm3, %v184_v39  ;;  %v129_v46 = vadd.f32 %v336_v15, %v128_v44  ;;  %v139_v47 = vadd.f32 %v336_v15, %v138_v45 }
  0x98   :  { %v172_v48 = vmax.f32 %v146_v42, 0.0  ;;  %v176_v49 = vmax.f32 %v156_v43, 0.0 }
  0x99   :  { %v165_v50 = vmax.f32 %v129_v46, 0.0  ;;  %v169_v51 = vmax.f32 %v139_v47, 0.0 }
  0x9a   :  { %v188_v52 = vpack.c.bf16 %v172_v48, %v172_v48  ;;  %v192_v53 = vpack.c.bf16 %v176_v49, %v176_v49 }
  0x9b   :  { %v181_v54 = vpack.c.bf16 %v165_v50, %v165_v50  ;;  %v185_v55 = vpack.c.bf16 %v169_v51, %v169_v51 }
  0x9c   :  { %205 = vst.msk [vmem:[%s421_s3 + $0x24] sm:$0xf] %vm195_vm3, %v188_v52 }
  0x9d   :  { %209 = vst.msk [vmem:[%s421_s3 + $0x34] sm:$0xf] %vm195_vm3, %v192_v53  ;;  %v148_v56 = vpop.f32.mrf.mxu2  ;;  %v158_v57 = vpop.f32.mrf.mxu3 }
  0x9e   :  { %198 = vst.msk [vmem:[%s421_s3 + $0x8] sm:$0xf] %vm195_vm3, %v181_v54  ;;  %v149_v58 = vadd.f32 %v336_v15, %v148_v56  ;;  %v159_v59 = vadd.f32 %v336_v15, %v158_v57  ;;  %v130_v60 = vpop.f32.mrf.mxu0  ;;  %v140_v61 = vpop.f32.mrf.mxu1 }
  0x9f   :  { %202 = vst.msk [vmem:[%s421_s3 + $0x18] sm:$0xf] %vm195_vm3, %v185_v55  ;;  %v131_v62 = vadd.f32 %v336_v15, %v130_v60  ;;  %v141_v63 = vadd.f32 %v336_v15, %v140_v61 }
  0xa0   :  { %v173_v0 = vmax.f32 %v149_v58, 0.0  ;;  %v177_v1 = vmax.f32 %v159_v59, 0.0 }
  0xa1   :  { %v166_v2 = vmax.f32 %v131_v62, 0.0  ;;  %v170_v3 = vmax.f32 %v141_v63, 0.0 }
  0xa2   :  { %v189_v4 = vpack.c.bf16 %v173_v0, %v173_v0  ;;  %v193_v5 = vpack.c.bf16 %v177_v1, %v177_v1 }
  0xa3   :  { %v182_v6 = vpack.c.bf16 %v166_v2, %v166_v2  ;;  %v186_v7 = vpack.c.bf16 %v170_v3, %v170_v3 }
  0xa4   :  { %206 = vst.msk [vmem:[%s421_s3 + $0x28] sm:$0xf] %vm195_vm3, %v189_v4 }
  0xa5   :  { %210 = vst.msk [vmem:[%s421_s3 + $0x38] sm:$0xf] %vm195_vm3, %v193_v5  ;;  %v150_v8 = vpop.f32.mrf.mxu2  ;;  %v160_v9 = vpop.f32.mrf.mxu3 }
  0xa6   :  { %199 = vst.msk [vmem:[%s421_s3 + $0xc] sm:$0xf] %vm195_vm3, %v182_v6  ;;  %v151_v10 = vadd.f32 %v336_v15, %v150_v8  ;;  %v161_v11 = vadd.f32 %v336_v15, %v160_v9 }
  0xa7   :  { %203 = vst.msk [vmem:[%s421_s3 + $0x1c] sm:$0xf] %vm195_vm3, %v186_v7 }
  0xa8   :  { %v174_v12 = vmax.f32 %v151_v10, 0.0  ;;  %v178_v13 = vmax.f32 %v161_v11, 0.0 }
  0xaa   :  { %v190_v14 = vpack.c.bf16 %v174_v12, %v174_v12  ;;  %v194_v16 = vpack.c.bf16 %v178_v13, %v178_v13 }
  0xac   :  { %207 = vst.msk [vmem:[%s421_s3 + $0x2c] sm:$0xf] %vm195_vm3, %v190_v14 }
  0xad   :  { %211 = vst.msk [vmem:[%s421_s3 + $0x3c] sm:$0xf] %vm195_vm3, %v194_v16 }

// kernel: conv_vae_forward.8
= control target key start
LH: loop header
LB: loop body
LE: loop exit
PB: predicated region body
PF: predicated region fallthrough
CT: control target
= control target key end

     0   :  { %vm201_vm0 = vcmask 261120   ;;  %vm273_vm1 = vcmask 519168   ;;  %s544_s1 = inlined_call_operand.vmem [shape: bf16[288,64], index: 1, kind: input, shape index: {}]   ;;  %s545_s0 = inlined_call_operand.vmem [shape: bf16[32,288], index: 0, kind: input, shape index: {}]   ;;  %s546_s2 = inlined_call_operand.vmem [shape: f32[1,64], index: 2, kind: input, shape index: {}]   ;;  %s547_s3 = inlined_call_operand.vmem [shape: bf16[32,64], index: 3, kind: output, shape index: {}]  }
   0x1   :  { %v393_v0 = vld [vmem:[%s544_s1 + $0x38] sm:$0xff]  ;;  %v392_v2 = vld [vmem:[%s544_s1 + $0x30] sm:$0xff]  ;;  %v403_v3 = vld [vmem:[%s544_s1 + $0x88] sm:$0xff] }
   0x2   :  { %v401_v1 = vld [vmem:[%s544_s1 + $0x78] sm:$0xff]  ;;  %208 = vmatpush.bf16.msra.mxu0 %v393_v0  ;;  %404 = vmatpush.bf16.msra.mxu3 %v393_v0  ;;  %v400_v4 = vld [vmem:[%s544_s1 + $0x70] sm:$0xff]  ;;  %v402_v5 = vld [vmem:[%s544_s1 + $0x80] sm:$0xff] }
   0x3   :  { %227 = vmatpush.bf16.msra.mxu1 %v401_v1  ;;  %252 = vmatpush.bf16.msra.mxu2 %v403_v3  ;;  %v292_v6 = vld [vmem:[%s545_s0 + $0x8] sm:$0xf]  ;;  %v382_v7 = vld [vmem:[%s545_s0 + $0x10] sm:$0xf0]  ;;  %v390_v11 = vld [vmem:[%s544_s1 + $0x20] sm:$0xff] }
   0x4   :  { %v391_v8 = vld [vmem:[%s544_s1 + $0x28] sm:$0xff]  ;;  %v293_v10 = vor.u32 %v382_v7, %v292_v6  ;;  %v398_v12 = vld [vmem:[%s544_s1 + $0x60] sm:$0xff]  ;;  %v389_v13 = vld [vmem:[%s544_s1 + $0x18] sm:$0xff] }
   0x5   :  { %v399_v9 = vld [vmem:[%s544_s1 + $0x68] sm:$0xff]  ;;  %v397_v14 = vld [vmem:[%s544_s1 + $0x58] sm:$0xff]  ;;  %v388_v15 = vld [vmem:[%s544_s1 + $0x10] sm:$0xff] }
   0x6   :  { %209 = vmatpush.bf16.msra.mxu0 %v392_v2  ;;  %405 = vmatpush.bf16.msra.mxu3 %v392_v2  ;;  %v396_v16 = vld [vmem:[%s544_s1 + $0x50] sm:$0xff]  ;;  %v304_v17 = vld [vmem:[%s545_s0 + $0x20] sm:$0xf]  ;;  %v385_v18 = vld [vmem:[%s545_s0 + $0x28] sm:$0xf0] }
   0x7   :  { %228 = vmatpush.bf16.msra.mxu1 %v400_v4  ;;  %253 = vmatpush.bf16.msra.mxu2 %v402_v5  ;;  %v387_v19 = vld [vmem:[%s544_s1 + $0x8] sm:$0xff]  ;;  %v305_v21 = vor.u32 %v385_v18, %v304_v17  ;;  %v386_v22 = vld [vmem:[%s544_s1] sm:$0xff]  ;;  %v296_v25 = vld [vmem:[%s545_s0 + $0x18] sm:$0xf] }
   0x8   :  { %v395_v20 = vld [vmem:[%s544_s1 + $0x48] sm:$0xff]  ;;  %v284_v23 = vld [vmem:[%s545_s0] sm:$0xf]  ;;  %v384_v26 = vld [vmem:[%s545_s0 + $0x20] sm:$0xf0] }
   0x9   :  { %v381_v24 = vld [vmem:[%s545_s0 + $0x8] sm:$0xf0]  ;;  %v394_v27 = vld [vmem:[%s544_s1 + $0x40] sm:$0xff]  ;;  %v286_v29 = vld [vmem:[%s545_s0 + $0xc] sm:$0xf0]  ;;  %v297_v31 = vor.u32 %v384_v26, %v296_v25 }
   0xa   :  { %210 = vmatpush.bf16.msra.mxu0 %v391_v8  ;;  %406 = vmatpush.bf16.msra.mxu3 %v391_v8  ;;  %v380_v28 = vld [vmem:[%s545_s0 + $0x4] sm:$0xf]  ;;  %v285_v30 = vor.u32 %v381_v24, %v284_v23  ;;  %v383_v33 = vld [vmem:[%s545_s0 + $0x1c] sm:$0xf]  ;;  %v298_v34 = vld [vmem:[%s545_s0 + $0x24] sm:$0xf0] }
   0xb   :  { %229 = vmatpush.bf16.msra.mxu1 %v399_v9  ;;  %378 = vmatmul.msk.bf16.vlgmr.msra.gmra.mxu2 %vm201_vm0, %v293_v10  ;;  %v289_v32 = vor.u32 %v380_v28, %v286_v29  ;;  %v301_v35 = vor.u32 %v383_v33, %v298_v34  ;;  %v412_v37 = vld [vmem:[%s546_s2] ss:$0 sm:$0xff] }
   0xe   :  { %211 = vmatpush.bf16.msra.mxu0 %v390_v11  ;;  %407 = vmatpush.bf16.msra.mxu3 %v390_v11 }
   0xf   :  { %230 = vmatpush.bf16.msra.mxu1 %v398_v12 }
  0x12   :  { %212 = vmatpush.bf16.msra.mxu0 %v389_v13  ;;  %408 = vmatpush.bf16.msra.mxu3 %v389_v13 }
  0x13   :  { %231 = vmatpush.bf16.msra.mxu1 %v397_v14 }
  0x16   :  { %213 = vmatpush.bf16.msra.mxu0 %v388_v15  ;;  %409 = vmatpush.bf16.msra.mxu3 %v388_v15 }
  0x17   :  { %232 = vmatpush.bf16.msra.mxu1 %v396_v16 }
  0x1a   :  { %214 = vmatpush.bf16.msra.mxu0 %v387_v19  ;;  %410 = vmatpush.bf16.msra.mxu3 %v387_v19 }
  0x1b   :  { %233 = vmatpush.bf16.msra.mxu1 %v395_v20  ;;  %379 = vmatmul.msk.bf16.gmra.mxu2 %vm201_vm0, %v305_v21 }
  0x1e   :  { %215 = vmatpush.bf16.msra.mxu0 %v386_v22  ;;  %411 = vmatpush.bf16.msra.mxu3 %v386_v22 }
  0x1f   :  { %234 = vmatpush.bf16.msra.mxu1 %v394_v27 }
  0x21   :  { %216 = vmatmul.bf16.vlgmr.msra.gmra.mxu0 %v285_v30  ;;  %221 = vmatmul.bf16.vlgmr.msra.gmra.mxu3 %v297_v31 }
  0x22   :  { %235 = vmatmul.bf16.vlgmr.msra.gmra.mxu1 %v289_v32 }
  0x32   :  { %240 = vmatmul.bf16.gmra.mxu1 %v301_v35 }
  0x8e   :  { %v255_v36 = vpop.f32.mrf.mxu2 }
  0x96   :  { %v257_v44 = vpop.f32.mrf.mxu2 }
  0x9e   :  { %v217_v38 = vpop.f32.mrf.mxu0  ;;  %v260_v55 = vpop.f32.mrf.mxu2 }
  0x9f   :  { %v218_v39 = vadd.f32 %v412_v37, %v217_v38  ;;  %v236_v40 = vpop.f32.mrf.mxu1 }
  0xa1   :  { %v237_v41 = vadd.f32 %v236_v40, %v218_v39 }
  0xa3   :  { %v256_v42 = vadd.f32 %v255_v36, %v237_v41 }
  0xa4   :  { %v222_v49 = vpop.f32.mrf.mxu3 }
  0xa5   :  { %v265_v43 = vmax.f32 %v256_v42, 0.0  ;;  %v223_v52 = vadd.f32 %v412_v37, %v222_v49 }
  0xa6   :  { %v219_v45 = vpop.f32.mrf.mxu0  ;;  %v262_v1 = vpop.f32.mrf.mxu2 }
  0xa7   :  { %v269_v46 = vpack.c.bf16 %v265_v43, %v265_v43  ;;  %v220_v47 = vadd.f32 %v412_v37, %v219_v45  ;;  %v238_v48 = vpop.f32.mrf.mxu1 }
  0xa9   :  { %274 = vst.msk [vmem:[%s547_s3] sm:$0xf] %vm273_vm1, %v269_v46  ;;  %v239_v50 = vadd.f32 %v238_v48, %v220_v47 }
  0xab   :  { %v258_v51 = vadd.f32 %v257_v44, %v239_v50 }
  0xac   :  { %v224_v59 = vpop.f32.mrf.mxu3 }
  0xad   :  { %v266_v53 = vmax.f32 %v258_v51, 0.0  ;;  %v225_v61 = vadd.f32 %v412_v37, %v224_v59 }
  0xaf   :  { %v270_v54 = vpack.c.bf16 %v266_v53, %v266_v53  ;;  %v241_v56 = vpop.f32.mrf.mxu1 }
  0xb0   :  { %v242_v57 = vadd.f32 %v241_v56, %v223_v52 }
  0xb1   :  { %275 = vst.msk [vmem:[%s547_s3 + $0x4] sm:$0xf] %vm273_vm1, %v270_v54 }
  0xb2   :  { %v261_v58 = vadd.f32 %v260_v55, %v242_v57 }
  0xb4   :  { %v267_v60 = vmax.f32 %v261_v58, 0.0 }
  0xb6   :  { %v271_v62 = vpack.c.bf16 %v267_v60, %v267_v60 }
  0xb7   :  { %v243_v63 = vpop.f32.mrf.mxu1 }
  0xb8   :  { %276 = vst.msk [vmem:[%s547_s3 + $0x8] sm:$0xf] %vm273_vm1, %v271_v62  ;;  %v244_v0 = vadd.f32 %v243_v63, %v225_v61 }
  0xba   :  { %v263_v2 = vadd.f32 %v262_v1, %v244_v0 }
  0xbc   :  { %v268_v3 = vmax.f32 %v263_v2, 0.0 }
  0xbe   :  { %v272_v4 = vpack.c.bf16 %v268_v3, %v268_v3 }
  0xc0   :  { %277 = vst.msk [vmem:[%s547_s3 + $0xc] sm:$0xf] %vm273_vm1, %v272_v4 }

// kernel: conv_vae_forward.10
= control target key start
LH: loop header
LB: loop body
LE: loop exit
PB: predicated region body
PF: predicated region fallthrough
CT: control target
= control target key end

     0   :  { %vm117_vm0 = vcmask 523264   ;;  %vm183_vm1 = vcmask 261120   ;;  %s419_s1 = inlined_call_operand.vmem [shape: bf16[64,288], index: 1, kind: input, shape index: {}]   ;;  %s420_s0 = inlined_call_operand.vmem [shape: bf16[32,64], index: 0, kind: input, shape index: {}]   ;;  %s421_s2 = inlined_call_operand.vmem [shape: f32[1,288], index: 2, kind: input, shape index: {}]   ;;  %s422_s3 = inlined_call_operand.vmem [shape: f32[32,288], index: 3, kind: output, shape index: {}]  }
   0x1   :  { %v271_v0 = vld [vmem:[%s419_s1 + $0x4c] sm:$0xf]  ;;  %v246_v1 = vld [vmem:[%s419_s1 + $0x54] sm:$0xf0]  ;;  %v252_v2 = vld [vmem:[%s419_s1 + $0x50] sm:$0xf] }
   0x2   :  { %v249_v3 = vor.u32 %v271_v0, %v246_v1  ;;  %v273_v4 = vld [vmem:[%s419_s1 + $0x58] sm:$0xf0]  ;;  %v268_v5 = vld [vmem:[%s419_s1 + $0x34] sm:$0xf]  ;;  %v234_v6 = vld [vmem:[%s419_s1 + $0x3c] sm:$0xf0] }
   0x3   :  { %v253_v7 = vor.u32 %v273_v4, %v252_v2  ;;  %v240_v8 = vld [vmem:[%s419_s1 + $0x38] sm:$0xf]  ;;  %v270_v9 = vld [vmem:[%s419_s1 + $0x40] sm:$0xf0]  ;;  %v244_v10 = vld [vmem:[%s419_s1 + $0x48] sm:$0xf]  ;;  %v237_v11 = vor.u32 %v268_v5, %v234_v6 }
   0x4   :  { %147 = vmatpush.bf16.msra.mxu1 %v249_v3  ;;  %v272_v12 = vld [vmem:[%s419_s1 + $0x50] sm:$0xf0]  ;;  %v241_v13 = vor.u32 %v270_v9, %v240_v8  ;;  %v265_v15 = vld [vmem:[%s419_s1 + $0x1c] sm:$0xf]  ;;  %v222_v16 = vld [vmem:[%s419_s1 + $0x24] sm:$0xf0] }
   0x5   :  { %166 = vmatpush.bf16.msra.mxu2 %v253_v7  ;;  %v245_v14 = vor.u32 %v272_v12, %v244_v10  ;;  %v232_v17 = vld [vmem:[%s419_s1 + $0x30] sm:$0xf]  ;;  %v228_v18 = vld [vmem:[%s419_s1 + $0x20] sm:$0xf]  ;;  %v267_v19 = vld [vmem:[%s419_s1 + $0x28] sm:$0xf0]  ;;  %v225_v22 = vor.u32 %v265_v15, %v222_v16 }
   0x6   :  { %v269_v20 = vld [vmem:[%s419_s1 + $0x38] sm:$0xf0]  ;;  %v220_v23 = vld [vmem:[%s419_s1 + $0x18] sm:$0xf]  ;;  %v266_v24 = vld [vmem:[%s419_s1 + $0x20] sm:$0xf0]  ;;  %v229_v25 = vor.u32 %v267_v19, %v228_v18 }
   0x7   :  { %274 = vmatpush.bf16.msra.mxu3 %v245_v14  ;;  %v233_v21 = vor.u32 %v269_v20, %v232_v17  ;;  %128 = vmatpush.bf16.msra.mxu0 %v245_v14  ;;  %v262_v26 = vld [vmem:[%s419_s1 + $0x4] sm:$0xf]  ;;  %v210_v27 = vld [vmem:[%s419_s1 + $0xc] sm:$0xf0]  ;;  %v216_v28 = vld [vmem:[%s419_s1 + $0x8] sm:$0xf]  ;;  %v221_v30 = vor.u32 %v266_v24, %v220_v23 }
   0x8   :  { %148 = vmatpush.bf16.msra.mxu1 %v237_v11  ;;  %v264_v29 = vld [vmem:[%s419_s1 + $0x10] sm:$0xf0]  ;;  %v213_v31 = vor.u32 %v262_v26, %v210_v27  ;;  %v208_v32 = vld [vmem:[%s419_s1] sm:$0xf]  ;;  %v263_v33 = vld [vmem:[%s419_s1 + $0x8] sm:$0xf0] }
   0x9   :  { %167 = vmatpush.bf16.msra.mxu2 %v241_v13  ;;  %v217_v34 = vor.u32 %v264_v29, %v216_v28  ;;  %v260_v35 = vld [vmem:[%s420_s0] sm:$0xff]  ;;  %v209_v36 = vor.u32 %v263_v33, %v208_v32  ;;  %v261_v37 = vld [vmem:[%s420_s0 + $0x8] sm:$0xff] }
   0xa   :  { %v35_v38 = vld [vmem:[%s421_s2] sm:$0x7] }
   0xb   :  { %275 = vmatpush.bf16.msra.mxu3 %v233_v21  ;;  %129 = vmatpush.bf16.msra.mxu0 %v233_v21  ;;  %v38_v39 = vperm.slane %v35_v38, 1  ;;  %v37_v42 = vperm.slane %v35_v38, 0  ;;  %v39_v43 = vperm.slane %v35_v38, 2 }
   0xc   :  { %149 = vmatpush.bf16.msra.mxu1 %v225_v22 }
   0xd   :  { %168 = vmatpush.bf16.msra.mxu2 %v229_v25 }
   0xf   :  { %276 = vmatpush.bf16.msra.mxu3 %v221_v30  ;;  %130 = vmatpush.bf16.msra.mxu0 %v221_v30 }
  0x10   :  { %150 = vmatpush.bf16.msra.mxu1 %v213_v31 }
  0x11   :  { %169 = vmatpush.bf16.msra.mxu2 %v217_v34 }
  0x13   :  { %256 = vmatmul.msk.bf16.vlgmr.msra.gmra.mxu1 %vm117_vm0, %v260_v35  ;;  %277 = vmatpush.bf16.msra.mxu3 %v209_v36 }
  0x14   :  { %258 = vmatmul.msk.bf16.vlgmr.msra.gmra.mxu2 %vm117_vm0, %v260_v35  ;;  %131 = vmatpush.bf16.msra.mxu0 %v209_v36 }
  0x16   :  { %255 = vmatmul.msk.bf16.vlgmr.msra.gmra.mxu3 %vm117_vm0, %v261_v37 }
  0x17   :  { %254 = vmatmul.msk.bf16.vlgmr.msra.gmra.mxu0 %vm117_vm0, %v260_v35 }
  0x23   :  { %257 = vmatmul.msk.bf16.gmra.mxu1 %vm117_vm0, %v261_v37 }
  0x24   :  { %259 = vmatmul.msk.bf16.gmra.mxu2 %vm117_vm0, %v261_v37 }
  0x90   :  { %v152_v40 = vpop.f32.mrf.mxu1 }
  0x91   :  { %v153_v41 = vadd.f32 %v152_v40, %v38_v39 }
  0x93   :  { %182 = vst [vmem:[%s422_s3 + $0x8] sm:$0xff] %v153_v41 }
  0x94   :  { %v133_v44 = vpop.f32.mrf.mxu0 }
  0x95   :  { %v134_v45 = vadd.f32 %v133_v44, %v37_v42 }
  0x97   :  { %v171_v46 = vpop.f32.mrf.mxu2  ;;  %181 = vst [vmem:[%s422_s3] sm:$0xff] %v134_v45 }
  0x98   :  { %v172_v47 = vadd.f32 %v171_v46, %v39_v43  ;;  %v154_v48 = vpop.f32.mrf.mxu1 }
  0x99   :  { %v155_v49 = vadd.f32 %v154_v48, %v38_v39  ;;  %v138_v50 = vpop.f32.mrf.mxu3 }
  0x9a   :  { %184 = vst.msk [vmem:[%s422_s3 + $0x10] sm:$0xff] %vm183_vm1, %v172_v47  ;;  %v139_v51 = vadd.f32 %v138_v50, %v37_v42 }
  0x9b   :  { %186 = vst [vmem:[%s422_s3 + $0x20] sm:$0xff] %v155_v49 }
  0x9c   :  { %188 = vst [vmem:[%s422_s3 + $0x30] sm:$0xff] %v139_v51  ;;  %v135_v52 = vpop.f32.mrf.mxu0 }
  0x9d   :  { %v136_v53 = vadd.f32 %v135_v52, %v37_v42 }
  0x9f   :  { %v173_v54 = vpop.f32.mrf.mxu2  ;;  %185 = vst [vmem:[%s422_s3 + $0x18] sm:$0xff] %v136_v53 }
  0xa0   :  { %v174_v55 = vadd.f32 %v173_v54, %v39_v43  ;;  %v157_v56 = vpop.f32.mrf.mxu1 }
  0xa1   :  { %v158_v57 = vadd.f32 %v157_v56, %v38_v39  ;;  %v140_v58 = vpop.f32.mrf.mxu3 }
  0xa2   :  { %187 = vst.msk [vmem:[%s422_s3 + $0x28] sm:$0xff] %vm183_vm1, %v174_v55  ;;  %v141_v59 = vadd.f32 %v140_v58, %v37_v42 }
  0xa3   :  { %189 = vst [vmem:[%s422_s3 + $0x38] sm:$0xff] %v158_v57 }
  0xa4   :  { %191 = vst [vmem:[%s422_s3 + $0x48] sm:$0xff] %v141_v59 }
  0xa7   :  { %v176_v60 = vpop.f32.mrf.mxu2 }
  0xa8   :  { %v177_v61 = vadd.f32 %v176_v60, %v39_v43  ;;  %v159_v62 = vpop.f32.mrf.mxu1 }
  0xa9   :  { %v160_v63 = vadd.f32 %v159_v62, %v38_v39 }
  0xaa   :  { %190 = vst.msk [vmem:[%s422_s3 + $0x40] sm:$0xff] %vm183_vm1, %v177_v61 }
  0xab   :  { %192 = vst [vmem:[%s422_s3 + $0x50] sm:$0xff] %v160_v63 }
  0xaf   :  { %v178_v0 = vpop.f32.mrf.mxu2 }
  0xb0   :  { %v179_v1 = vadd.f32 %v178_v0, %v39_v43 }
  0xb2   :  { %193 = vst.msk [vmem:[%s422_s3 + $0x58] sm:$0xff] %vm183_vm1, %v179_v1 }

// kernel: conv_vae_forward.9
= control target key start
LH: loop header
LB: loop body
LE: loop exit
PB: predicated region body
PF: predicated region fallthrough
CT: control target
= control target key end

     0   :  { %16 = vsyncpa [#allocation3], 0  ;;  %s2785_s0 = inlined_call_operand.vmem [shape: bf16[2,1024], index: 0, kind: input, shape index: {}]   ;;  %s2786_s1 = inlined_call_operand.vmem [shape: bf16[1024,8], index: 1, kind: input, shape index: {}]   ;;  %s2787_s2 = inlined_call_operand.vmem [shape: f32[1,8], index: 2, kind: input, shape index: {}]   ;;  %s2788_s3 = inlined_call_operand.vmem [shape: bf16[1024,8], index: 3, kind: input, shape index: {}]   ;;  %s2789_s4 = inlined_call_operand.vmem [shape: f32[1,8], index: 4, kind: input, shape index: {}]   ;;  %s2790_s5 = inlined_call_operand.vmem [shape: f32[2,8], index: 5, kind: input, shape index: {}]   ;;  %s2791_s6 = inlined_call_operand.vmem [shape: f32[8,1024], index: 6, kind: input, shape index: {}]   ;;  %s2792_s7 = inlined_call_operand.vmem [shape: f32[1,1024], index: 7, kind: input, shape index: {}]   ;;  %s2793_s8 = inlined_call_operand.hbm [shape: f32[2,8], index: 8, kind: output, shape index: {0}]   ;;  %s2794_s9 = inlined_call_operand.hbm [shape: f32[2,8], index: 9, kind: output, shape index: {1}]   ;;  %s2795_s10 = inlined_call_operand.vmem [shape: bf16[2,1024], index: 10, kind: output, shape index: {2}]  }
   0x1   :  { %v2111_v0 = vld [vmem:[%s2786_s1 + $0x38] sm:$0xff]  ;;  %v2110_v4 = vld [vmem:[%s2786_s1 + $0x30] sm:$0xff]  ;;  %v2109_v8 = vld [vmem:[%s2786_s1 + $0x28] sm:$0xff] }
   0x2   :  { %v2119_v1 = vld [vmem:[%s2786_s1 + $0x78] sm:$0xff]  ;;  %569 = vmatpush.bf16.msra.mxu0 %v2111_v0  ;;  %v2118_v5 = vld [vmem:[%s2786_s1 + $0x70] sm:$0xff]  ;;  %v2117_v9 = vld [vmem:[%s2786_s1 + $0x68] sm:$0xff] }
   0x3   :  { %v2127_v2 = vld [vmem:[%s2786_s1 + $0xb8] sm:$0xff]  ;;  %582 = vmatpush.bf16.msra.mxu1 %v2119_v1  ;;  %v2126_v6 = vld [vmem:[%s2786_s1 + $0xb0] sm:$0xff]  ;;  %v2125_v10 = vld [vmem:[%s2786_s1 + $0xa8] sm:$0xff] }
   0x4   :  { %v2135_v3 = vld [vmem:[%s2786_s1 + $0xf8] sm:$0xff]  ;;  %595 = vmatpush.bf16.msra.mxu2 %v2127_v2  ;;  %v2134_v7 = vld [vmem:[%s2786_s1 + $0xf0] sm:$0xff]  ;;  %v2133_v11 = vld [vmem:[%s2786_s1 + $0xe8] sm:$0xff] }
   0x5   :  { %608 = vmatpush.bf16.msra.mxu3 %v2135_v3  ;;  %v2108_v12 = vld [vmem:[%s2786_s1 + $0x20] sm:$0xff]  ;;  %v2107_v16 = vld [vmem:[%s2786_s1 + $0x18] sm:$0xff]  ;;  %v2106_v20 = vld [vmem:[%s2786_s1 + $0x10] sm:$0xff] }
   0x6   :  { %570 = vmatpush.bf16.msra.mxu0 %v2110_v4  ;;  %v2116_v13 = vld [vmem:[%s2786_s1 + $0x60] sm:$0xff]  ;;  %v2115_v17 = vld [vmem:[%s2786_s1 + $0x58] sm:$0xff]  ;;  %v2114_v21 = vld [vmem:[%s2786_s1 + $0x50] sm:$0xff] }
   0x7   :  { %583 = vmatpush.bf16.msra.mxu1 %v2118_v5  ;;  %v2124_v14 = vld [vmem:[%s2786_s1 + $0xa0] sm:$0xff]  ;;  %v2123_v18 = vld [vmem:[%s2786_s1 + $0x98] sm:$0xff]  ;;  %v2122_v23 = vld [vmem:[%s2786_s1 + $0x90] sm:$0xff] }
   0x8   :  { %596 = vmatpush.bf16.msra.mxu2 %v2126_v6  ;;  %v2132_v15 = vld [vmem:[%s2786_s1 + $0xe0] sm:$0xff]  ;;  %v2131_v19 = vld [vmem:[%s2786_s1 + $0xd8] sm:$0xff]  ;;  %v2130_v24 = vld [vmem:[%s2786_s1 + $0xd0] sm:$0xff] }
   0x9   :  { %609 = vmatpush.bf16.msra.mxu3 %v2134_v7  ;;  %v2416_v22 = vld [vmem:[%s2785_s0] sm:$0xff] }
   0xa   :  { %571 = vmatpush.bf16.msra.mxu0 %v2109_v8  ;;  %168 = vst [vmem:[#allocation1] ss:$9 sm:$0xff] %v2416_v22 }
   0xb   :  { %584 = vmatpush.bf16.msra.mxu1 %v2117_v9 }
   0xc   :  { %597 = vmatpush.bf16.msra.mxu2 %v2125_v10 }
   0xd   :  { %610 = vmatpush.bf16.msra.mxu3 %v2133_v11 }
   0xe   :  { %572 = vmatpush.bf16.msra.mxu0 %v2108_v12 }
   0xf   :  { %585 = vmatpush.bf16.msra.mxu1 %v2116_v13 }
  0x10   :  { %598 = vmatpush.bf16.msra.mxu2 %v2124_v14 }
  0x11   :  { %611 = vmatpush.bf16.msra.mxu3 %v2132_v15 }
  0x12   :  { %573 = vmatpush.bf16.msra.mxu0 %v2107_v16 }
  0x13   :  { %586 = vmatpush.bf16.msra.mxu1 %v2115_v17 }
  0x14   :  { %599 = vmatpush.bf16.msra.mxu2 %v2123_v18 }
  0x15   :  { %612 = vmatpush.bf16.msra.mxu3 %v2131_v19 }
  0x16   :  { %17 = vsyncpa [#allocation5], 0  ;;  %574 = vmatpush.bf16.msra.mxu0 %v2106_v20  ;;  %v2105_v25 = vld [vmem:[%s2786_s1 + $0x8] sm:$0xff]  ;;  %v2104_v29 = vld [vmem:[%s2786_s1] sm:$0xff]  ;;  %vm1506_vm0 = vcmask 58368   ;;  %vm1342_vm1 = vcmask 64512  }
  0x17   :  { %587 = vmatpush.bf16.msra.mxu1 %v2114_v21  ;;  %v2113_v26 = vld [vmem:[%s2786_s1 + $0x48] sm:$0xff]  ;;  %v2112_v30 = vld [vmem:[%s2786_s1 + $0x40] sm:$0xff]  ;;  %v2143_v33 = vld [vmem:[%s2786_s1 + $0x138] sm:$0xff]  ;;  %s2290_s11 = smov [#allocation2]   ;;  %s1555_s15 = sshll.u32 %s2793_s8, 4  ;;  %vm1528_vm2 = vcmask 1042434   ;;  %s1556_s15 = int_to_ptr.hbm [resolvable:$true] %s1555_s15 }
  0x18   :  { %600 = vmatpush.bf16.msra.mxu2 %v2122_v23  ;;  %v2121_v27 = vld [vmem:[%s2786_s1 + $0x88] sm:$0xff]  ;;  %v2120_v31 = vld [vmem:[%s2786_s1 + $0x80] sm:$0xff]  ;;  %v2151_v34 = vld [vmem:[%s2786_s1 + $0x178] sm:$0xff]  ;;  %s1553_s12 = sshll.u32 %s2290_s11, 4  ;;  %s1566_s17 = sshll.u32 %s2794_s9, 4  ;;  %vm1524_vm3 = vcmask 1040384   ;;  %s1554_s12 = int_to_ptr.vmem [resolvable:$true] %s1553_s12  ;;  %s1567_s17 = int_to_ptr.hbm [resolvable:$true] %s1566_s17 }
  0x19   :  { %613 = vmatpush.bf16.msra.mxu3 %v2130_v24  ;;  %v2129_v28 = vld [vmem:[%s2786_s1 + $0xc8] sm:$0xff]  ;;  %v2128_v32 = vld [vmem:[%s2786_s1 + $0xc0] sm:$0xff]  ;;  %v2159_v35 = vld [vmem:[%s2786_s1 + $0x1b8] sm:$0xff]  ;;  %vm1532_vm4 = vcmask 1041408   ;;  %vm1534_vm5 = vcmask 1044484   ;;  %vm1538_vm6 = vcmask 1046534  }
  0x1a   :  { %575 = vmatpush.bf16.msra.mxu0 %v2105_v25  ;;  %v2167_v36 = vld [vmem:[%s2786_s1 + $0x1f8] sm:$0xff]  ;;  %v2142_v37 = vld [vmem:[%s2786_s1 + $0x130] sm:$0xff]  ;;  %v169_v39 = vld [vmem:[#allocation1] sm:$0xff]  ;;  %vm1542_vm7 = vcmask 1045508   ;;  %vm1544_vm8 = vcmask 1043456  }
  0x1b   :  { %588 = vmatpush.bf16.msra.mxu1 %v2113_v26  ;;  %v171_v38 = vld [vmem:[#allocation1 + $0x12] sm:$0xff]  ;;  %v172_v41 = vld [vmem:[#allocation1 + $0x1b] sm:$0xff]  ;;  %v170_v42 = vld [vmem:[#allocation1 + $0x9] sm:$0xff] }
  0x1c   :  { %601 = vmatpush.bf16.msra.mxu2 %v2121_v27  ;;  %v2150_v40 = vld [vmem:[%s2786_s1 + $0x170] sm:$0xff]  ;;  %v2141_v45 = vld [vmem:[%s2786_s1 + $0x128] sm:$0xff]  ;;  %v176_v51 = vld [vmem:[#allocation1 + $0x3f] sm:$0xff] }
  0x1d   :  { %614 = vmatpush.bf16.msra.mxu3 %v2129_v28  ;;  %v2158_v43 = vld [vmem:[%s2786_s1 + $0x1b0] sm:$0xff]  ;;  %v2149_v46 = vld [vmem:[%s2786_s1 + $0x168] sm:$0xff]  ;;  %v2140_v53 = vld [vmem:[%s2786_s1 + $0x120] sm:$0xff] }
  0x1e   :  { %576 = vmatpush.bf16.msra.mxu0 %v2104_v29  ;;  %v2166_v44 = vld [vmem:[%s2786_s1 + $0x1f0] sm:$0xff]  ;;  %v2157_v47 = vld [vmem:[%s2786_s1 + $0x1a8] sm:$0xff]  ;;  %v2148_v54 = vld [vmem:[%s2786_s1 + $0x160] sm:$0xff] }
  0x1f   :  { %589 = vmatpush.bf16.msra.mxu1 %v2112_v30  ;;  %v2165_v48 = vld [vmem:[%s2786_s1 + $0x1e8] sm:$0xff]  ;;  %v175_v49 = vld [vmem:[#allocation1 + $0x36] sm:$0xff]  ;;  %v2156_v55 = vld [vmem:[%s2786_s1 + $0x1a0] sm:$0xff] }
  0x20   :  { %602 = vmatpush.bf16.msra.mxu2 %v2120_v31  ;;  %v173_v50 = vld [vmem:[#allocation1 + $0x24] sm:$0xff]  ;;  %v174_v52 = vld [vmem:[#allocation1 + $0x2d] sm:$0xff]  ;;  %v2139_v57 = vld [vmem:[%s2786_s1 + $0x118] sm:$0xff] }
  0x21   :  { %615 = vmatpush.bf16.msra.mxu3 %v2128_v32  ;;  %577 = vmatmul.bf16.vlgmr.msra.gmra.mxu0 %v169_v39  ;;  %805 = vst [vmem:[#allocation1] ss:$9 sm:$0xff] %v2416_v22  ;;  %v2164_v56 = vld [vmem:[%s2786_s1 + $0x1e0] sm:$0xff]  ;;  %v2147_v58 = vld [vmem:[%s2786_s1 + $0x158] sm:$0xff]  ;;  %v2138_v61 = vld [vmem:[%s2786_s1 + $0x110] sm:$0xff] }
  0x22   :  { %621 = vmatpush.bf16.msrb.mxu0 %v2143_v33  ;;  %590 = vmatmul.bf16.vlgmr.msra.gmra.mxu1 %v170_v42  ;;  %v2155_v59 = vld [vmem:[%s2786_s1 + $0x198] sm:$0xff]  ;;  %v2146_v62 = vld [vmem:[%s2786_s1 + $0x150] sm:$0xff]  ;;  %v2137_v1 = vld [vmem:[%s2786_s1 + $0x108] sm:$0xff] }
  0x23   :  { %634 = vmatpush.bf16.msrb.mxu1 %v2151_v34  ;;  %603 = vmatmul.bf16.vlgmr.msra.gmra.mxu2 %v171_v38  ;;  %v2163_v60 = vld [vmem:[%s2786_s1 + $0x1d8] sm:$0xff]  ;;  %v2154_v63 = vld [vmem:[%s2786_s1 + $0x190] sm:$0xff]  ;;  %v2145_v2 = vld [vmem:[%s2786_s1 + $0x148] sm:$0xff] }
  0x24   :  { %647 = vmatpush.bf16.msrb.mxu2 %v2159_v35  ;;  %616 = vmatmul.bf16.vlgmr.msra.gmra.mxu3 %v172_v41  ;;  %v2162_v0 = vld [vmem:[%s2786_s1 + $0x1d0] sm:$0xff]  ;;  %v2153_v3 = vld [vmem:[%s2786_s1 + $0x188] sm:$0xff]  ;;  %v2136_v5 = vld [vmem:[%s2786_s1 + $0x100] sm:$0xff] }
  0x25   :  { %660 = vmatpush.bf16.msrb.mxu3 %v2167_v36  ;;  %v2161_v4 = vld [vmem:[%s2786_s1 + $0x1c8] sm:$0xff]  ;;  %v2144_v6 = vld [vmem:[%s2786_s1 + $0x140] sm:$0xff]  ;;  %v2175_v9 = vld [vmem:[%s2788_s3 + $0x38] sm:$0xff] }
  0x26   :  { %622 = vmatpush.bf16.msrb.mxu0 %v2142_v37  ;;  %v2152_v7 = vld [vmem:[%s2786_s1 + $0x180] sm:$0xff]  ;;  %v2183_v10 = vld [vmem:[%s2788_s3 + $0x78] sm:$0xff]  ;;  %v2174_v13 = vld [vmem:[%s2788_s3 + $0x30] sm:$0xff] }
  0x27   :  { %635 = vmatpush.bf16.msrb.mxu1 %v2150_v40  ;;  %v2160_v8 = vld [vmem:[%s2786_s1 + $0x1c0] sm:$0xff]  ;;  %v2191_v11 = vld [vmem:[%s2788_s3 + $0xb8] sm:$0xff]  ;;  %v2182_v14 = vld [vmem:[%s2788_s3 + $0x70] sm:$0xff] }
  0x28   :  { %648 = vmatpush.bf16.msrb.mxu2 %v2158_v43  ;;  %v2199_v12 = vld [vmem:[%s2788_s3 + $0xf8] sm:$0xff]  ;;  %v2190_v15 = vld [vmem:[%s2788_s3 + $0xb0] sm:$0xff]  ;;  %v2173_v17 = vld [vmem:[%s2788_s3 + $0x28] sm:$0xff] }
  0x29   :  { %661 = vmatpush.bf16.msrb.mxu3 %v2166_v44  ;;  %v2198_v16 = vld [vmem:[%s2788_s3 + $0xf0] sm:$0xff]  ;;  %v2181_v18 = vld [vmem:[%s2788_s3 + $0x68] sm:$0xff]  ;;  %v2172_v21 = vld [vmem:[%s2788_s3 + $0x20] sm:$0xff] }
  0x2a   :  { %623 = vmatpush.bf16.msrb.mxu0 %v2141_v45  ;;  %v2189_v19 = vld [vmem:[%s2788_s3 + $0xa8] sm:$0xff]  ;;  %v2180_v22 = vld [vmem:[%s2788_s3 + $0x60] sm:$0xff]  ;;  %v2171_v25 = vld [vmem:[%s2788_s3 + $0x18] sm:$0xff] }
  0x2b   :  { %636 = vmatpush.bf16.msrb.mxu1 %v2149_v46  ;;  %v2197_v20 = vld [vmem:[%s2788_s3 + $0xe8] sm:$0xff]  ;;  %v2188_v23 = vld [vmem:[%s2788_s3 + $0xa0] sm:$0xff]  ;;  %v2179_v26 = vld [vmem:[%s2788_s3 + $0x58] sm:$0xff] }
  0x2c   :  { %649 = vmatpush.bf16.msrb.mxu2 %v2157_v47  ;;  %v2196_v24 = vld [vmem:[%s2788_s3 + $0xe0] sm:$0xff]  ;;  %v2187_v27 = vld [vmem:[%s2788_s3 + $0x98] sm:$0xff]  ;;  %v2170_v29 = vld [vmem:[%s2788_s3 + $0x10] sm:$0xff] }
  0x2d   :  { %662 = vmatpush.bf16.msrb.mxu3 %v2165_v48  ;;  %v2195_v28 = vld [vmem:[%s2788_s3 + $0xd8] sm:$0xff]  ;;  %v2178_v30 = vld [vmem:[%s2788_s3 + $0x50] sm:$0xff]  ;;  %v2169_v33 = vld [vmem:[%s2788_s3 + $0x8] sm:$0xff] }
  0x2e   :  { %624 = vmatpush.bf16.msrb.mxu0 %v2140_v53  ;;  %v2186_v31 = vld [vmem:[%s2788_s3 + $0x90] sm:$0xff]  ;;  %v2177_v34 = vld [vmem:[%s2788_s3 + $0x48] sm:$0xff]  ;;  %v2168_v37 = vld [vmem:[%s2788_s3] sm:$0xff] }
  0x2f   :  { %637 = vmatpush.bf16.msrb.mxu1 %v2148_v54  ;;  %v2194_v32 = vld [vmem:[%s2788_s3 + $0xd0] sm:$0xff]  ;;  %v2185_v35 = vld [vmem:[%s2788_s3 + $0x88] sm:$0xff]  ;;  %v2176_v38 = vld [vmem:[%s2788_s3 + $0x40] sm:$0xff] }
  0x30   :  { %650 = vmatpush.bf16.msrb.mxu2 %v2156_v55  ;;  %v2193_v36 = vld [vmem:[%s2788_s3 + $0xc8] sm:$0xff]  ;;  %v2184_v39 = vld [vmem:[%s2788_s3 + $0x80] sm:$0xff]  ;;  %v2207_v41 = vld [vmem:[%s2788_s3 + $0x138] sm:$0xff] }
  0x31   :  { %663 = vmatpush.bf16.msrb.mxu3 %v2164_v56  ;;  %v2192_v40 = vld [vmem:[%s2788_s3 + $0xc0] sm:$0xff]  ;;  %v2215_v42 = vld [vmem:[%s2788_s3 + $0x178] sm:$0xff]  ;;  %v2206_v45 = vld [vmem:[%s2788_s3 + $0x130] sm:$0xff] }
  0x32   :  { %625 = vmatpush.bf16.msrb.mxu0 %v2139_v57  ;;  %v2223_v43 = vld [vmem:[%s2788_s3 + $0x1b8] sm:$0xff]  ;;  %v806_v47 = vld [vmem:[#allocation1] sm:$0xff]  ;;  %v2214_v48 = vld [vmem:[%s2788_s3 + $0x170] sm:$0xff] }
  0x33   :  { %638 = vmatpush.bf16.msrb.mxu1 %v2147_v58  ;;  %v2231_v44 = vld [vmem:[%s2788_s3 + $0x1f8] sm:$0xff]  ;;  %v2205_v53 = vld [vmem:[%s2788_s3 + $0x128] sm:$0xff]  ;;  %v2204_v57 = vld [vmem:[%s2788_s3 + $0x120] sm:$0xff] }
  0x34   :  { %651 = vmatpush.bf16.msrb.mxu2 %v2155_v59  ;;  %v808_v46 = vld [vmem:[#allocation1 + $0x12] sm:$0xff]  ;;  %v2213_v54 = vld [vmem:[%s2788_s3 + $0x168] sm:$0xff]  ;;  %v2212_v58 = vld [vmem:[%s2788_s3 + $0x160] sm:$0xff] }
  0x35   :  { %664 = vmatpush.bf16.msrb.mxu3 %v2163_v60  ;;  %v2221_v55 = vld [vmem:[%s2788_s3 + $0x1a8] sm:$0xff]  ;;  %v2220_v59 = vld [vmem:[%s2788_s3 + $0x1a0] sm:$0xff] }
  0x36   :  { %626 = vmatpush.bf16.msrb.mxu0 %v2138_v61  ;;  %v2229_v56 = vld [vmem:[%s2788_s3 + $0x1e8] sm:$0xff]  ;;  %v2228_v60 = vld [vmem:[%s2788_s3 + $0x1e0] sm:$0xff]  ;;  %v2203_v61 = vld [vmem:[%s2788_s3 + $0x118] sm:$0xff] }
  0x37   :  { %639 = vmatpush.bf16.msrb.mxu1 %v2146_v62  ;;  %v2211_v62 = vld [vmem:[%s2788_s3 + $0x158] sm:$0xff] }
  0x38   :  { %652 = vmatpush.bf16.msrb.mxu2 %v2154_v63  ;;  %v2219_v63 = vld [vmem:[%s2788_s3 + $0x198] sm:$0xff] }
  0x39   :  { %665 = vmatpush.bf16.msrb.mxu3 %v2162_v0  ;;  %v2227_v0 = vld [vmem:[%s2788_s3 + $0x1d8] sm:$0xff] }
  0x3a   :  { %627 = vmatpush.bf16.msrb.mxu0 %v2137_v1  ;;  %v2202_v1 = vld [vmem:[%s2788_s3 + $0x110] sm:$0xff] }
  0x3b   :  { %640 = vmatpush.bf16.msrb.mxu1 %v2145_v2  ;;  %v2210_v2 = vld [vmem:[%s2788_s3 + $0x150] sm:$0xff] }
  0x3c   :  { %653 = vmatpush.bf16.msrb.mxu2 %v2153_v3  ;;  %v2218_v3 = vld [vmem:[%s2788_s3 + $0x190] sm:$0xff] }
  0x3d   :  { %666 = vmatpush.bf16.msrb.mxu3 %v2161_v4  ;;  %v2226_v4 = vld [vmem:[%s2788_s3 + $0x1d0] sm:$0xff] }
  0x3e   :  { %628 = vmatpush.bf16.msrb.mxu0 %v2136_v5  ;;  %v2201_v5 = vld [vmem:[%s2788_s3 + $0x108] sm:$0xff] }
  0x3f   :  { %641 = vmatpush.bf16.msrb.mxu1 %v2144_v6  ;;  %v2209_v6 = vld [vmem:[%s2788_s3 + $0x148] sm:$0xff] }
  0x40   :  { %654 = vmatpush.bf16.msrb.mxu2 %v2152_v7  ;;  %v2217_v7 = vld [vmem:[%s2788_s3 + $0x188] sm:$0xff] }
  0x41   :  { %667 = vmatpush.bf16.msrb.mxu3 %v2160_v8  ;;  %629 = vmatmul.bf16.vlgmr.msrb.gmra.mxu0 %v173_v50  ;;  %v807_v50 = vld [vmem:[#allocation1 + $0x9] sm:$0xff] }
  0x42   :  { %1206 = vmatpush.bf16.msra.mxu0 %v2175_v9  ;;  %642 = vmatmul.bf16.vlgmr.msrb.gmra.mxu1 %v174_v52  ;;  %v2230_v52 = vld [vmem:[%s2788_s3 + $0x1f0] sm:$0xff]  ;;  %v2225_v8 = vld [vmem:[%s2788_s3 + $0x1c8] sm:$0xff]  ;;  %v2200_v9 = vld [vmem:[%s2788_s3 + $0x100] sm:$0xff] }
  0x43   :  { %1219 = vmatpush.bf16.msra.mxu1 %v2183_v10  ;;  %655 = vmatmul.bf16.vlgmr.msrb.gmra.mxu2 %v175_v49  ;;  %v809_v49 = vld [vmem:[#allocation1 + $0x1b] sm:$0xff] }
  0x44   :  { %1232 = vmatpush.bf16.msra.mxu2 %v2191_v11  ;;  %668 = vmatmul.bf16.vlgmr.msrb.gmra.mxu3 %v176_v51  ;;  %v2222_v51 = vld [vmem:[%s2788_s3 + $0x1b0] sm:$0xff]  ;;  %v2208_v10 = vld [vmem:[%s2788_s3 + $0x140] sm:$0xff] }
  0x45   :  { %1245 = vmatpush.bf16.msra.mxu3 %v2199_v12  ;;  %v2216_v11 = vld [vmem:[%s2788_s3 + $0x180] sm:$0xff] }
  0x46   :  { %1207 = vmatpush.bf16.msra.mxu0 %v2174_v13  ;;  %v2224_v12 = vld [vmem:[%s2788_s3 + $0x1c0] sm:$0xff] }
  0x47   :  { %1220 = vmatpush.bf16.msra.mxu1 %v2182_v14  ;;  %v810_v13 = vld [vmem:[#allocation1 + $0x24] sm:$0xff]  ;;  %v811_v14 = vld [vmem:[#allocation1 + $0x2d] sm:$0xff] }
  0x48   :  { %1233 = vmatpush.bf16.msra.mxu2 %v2190_v15  ;;  %v812_v15 = vld [vmem:[#allocation1 + $0x36] sm:$0xff] }
  0x49   :  { %1246 = vmatpush.bf16.msra.mxu3 %v2198_v16  ;;  %v813_v16 = vld [vmem:[#allocation1 + $0x3f] sm:$0xff] }
  0x4a   :  { %1208 = vmatpush.bf16.msra.mxu0 %v2173_v17 }
  0x4b   :  { %1221 = vmatpush.bf16.msra.mxu1 %v2181_v18 }
  0x4c   :  { %1234 = vmatpush.bf16.msra.mxu2 %v2189_v19 }
  0x4d   :  { %1247 = vmatpush.bf16.msra.mxu3 %v2197_v20 }
  0x4e   :  { %1209 = vmatpush.bf16.msra.mxu0 %v2172_v21 }
  0x4f   :  { %1222 = vmatpush.bf16.msra.mxu1 %v2180_v22 }
  0x50   :  { %1235 = vmatpush.bf16.msra.mxu2 %v2188_v23  ;;  %v2234_v23 = vld [vmem:[%s2787_s2] ss:$0 sm:$0xff] }
  0x51   :  { %1248 = vmatpush.bf16.msra.mxu3 %v2196_v24 }
  0x52   :  { %1210 = vmatpush.bf16.msra.mxu0 %v2171_v25 }
  0x53   :  { %1223 = vmatpush.bf16.msra.mxu1 %v2179_v26 }
  0x54   :  { %1236 = vmatpush.bf16.msra.mxu2 %v2187_v27 }
  0x55   :  { %1249 = vmatpush.bf16.msra.mxu3 %v2195_v28 }
  0x56   :  { %1211 = vmatpush.bf16.msra.mxu0 %v2170_v29 }
  0x57   :  { %1224 = vmatpush.bf16.msra.mxu1 %v2178_v30 }
  0x58   :  { %1237 = vmatpush.bf16.msra.mxu2 %v2186_v31 }
  0x59   :  { %1250 = vmatpush.bf16.msra.mxu3 %v2194_v32 }
  0x5a   :  { %1212 = vmatpush.bf16.msra.mxu0 %v2169_v33 }
  0x5b   :  { %1225 = vmatpush.bf16.msra.mxu1 %v2177_v34 }
  0x5c   :  { %1238 = vmatpush.bf16.msra.mxu2 %v2185_v35 }
  0x5d   :  { %1251 = vmatpush.bf16.msra.mxu3 %v2193_v36 }
  0x5e   :  { %1213 = vmatpush.bf16.msra.mxu0 %v2168_v37 }
  0x5f   :  { %1226 = vmatpush.bf16.msra.mxu1 %v2176_v38 }
  0x60   :  { %1239 = vmatpush.bf16.msra.mxu2 %v2184_v39 }
  0x61   :  { %1252 = vmatpush.bf16.msra.mxu3 %v2192_v40  ;;  %1214 = vmatmul.bf16.vlgmr.msra.gmra.mxu0 %v806_v47 }
  0x62   :  { %1258 = vmatpush.bf16.msrb.mxu0 %v2207_v41  ;;  %1227 = vmatmul.bf16.vlgmr.msra.gmra.mxu1 %v807_v50 }
  0x63   :  { %1271 = vmatpush.bf16.msrb.mxu1 %v2215_v42  ;;  %1240 = vmatmul.bf16.vlgmr.msra.gmra.mxu2 %v808_v46 }
  0x64   :  { %1284 = vmatpush.bf16.msrb.mxu2 %v2223_v43  ;;  %1253 = vmatmul.bf16.vlgmr.msra.gmra.mxu3 %v809_v49 }
  0x65   :  { %1297 = vmatpush.bf16.msrb.mxu3 %v2231_v44 }
  0x66   :  { %1259 = vmatpush.bf16.msrb.mxu0 %v2206_v45 }
  0x67   :  { %1272 = vmatpush.bf16.msrb.mxu1 %v2214_v48  ;;  %v2235_v48 = vld [vmem:[%s2789_s4] ss:$0 sm:$0xff] }
  0x68   :  { %1285 = vmatpush.bf16.msrb.mxu2 %v2222_v51 }
  0x69   :  { %1298 = vmatpush.bf16.msrb.mxu3 %v2230_v52 }
  0x6a   :  { %1260 = vmatpush.bf16.msrb.mxu0 %v2205_v53  ;;  %v1318_v53 = vld [vmem:[%s2791_s6 + $0x10] sm:$0xff] }
  0x6b   :  { %1273 = vmatpush.bf16.msrb.mxu1 %v2213_v54  ;;  %v1319_v54 = vld [vmem:[%s2791_s6 + $0x18] sm:$0xff] }
  0x6c   :  { %1286 = vmatpush.bf16.msrb.mxu2 %v2221_v55  ;;  %v1316_v55 = vld [vmem:[%s2791_s6] sm:$0xff] }
  0x6d   :  { %1299 = vmatpush.bf16.msrb.mxu3 %v2229_v56  ;;  %v1317_v56 = vld [vmem:[%s2791_s6 + $0x8] sm:$0xff] }
  0x6e   :  { %1261 = vmatpush.bf16.msrb.mxu0 %v2204_v57 }
  0x6f   :  { %1274 = vmatpush.bf16.msrb.mxu1 %v2212_v58  ;;  %v1322_v58 = vld [vmem:[%s2791_s6 + $0x30] sm:$0xff] }
  0x70   :  { %1287 = vmatpush.bf16.msrb.mxu2 %v2220_v59  ;;  %v1323_v59 = vld [vmem:[%s2791_s6 + $0x38] sm:$0xff] }
  0x71   :  { %1300 = vmatpush.bf16.msrb.mxu3 %v2228_v60  ;;  %v1320_v60 = vld [vmem:[%s2791_s6 + $0x20] sm:$0xff] }
  0x72   :  { %1262 = vmatpush.bf16.msrb.mxu0 %v2203_v61  ;;  %v1321_v61 = vld [vmem:[%s2791_s6 + $0x28] sm:$0xff] }
  0x73   :  { %1275 = vmatpush.bf16.msrb.mxu1 %v2211_v62 }
  0x74   :  { %1288 = vmatpush.bf16.msrb.mxu2 %v2219_v63 }
  0x75   :  { %1301 = vmatpush.bf16.msrb.mxu3 %v2227_v0 }
  0x76   :  { %1263 = vmatpush.bf16.msrb.mxu0 %v2202_v1 }
  0x77   :  { %1276 = vmatpush.bf16.msrb.mxu1 %v2210_v2 }
  0x78   :  { %1289 = vmatpush.bf16.msrb.mxu2 %v2218_v3 }
  0x79   :  { %1302 = vmatpush.bf16.msrb.mxu3 %v2226_v4 }
  0x7a   :  { %1264 = vmatpush.bf16.msrb.mxu0 %v2201_v5 }
  0x7b   :  { %1277 = vmatpush.bf16.msrb.mxu1 %v2209_v6 }
  0x7c   :  { %1290 = vmatpush.bf16.msrb.mxu2 %v2217_v7 }
  0x7d   :  { %1303 = vmatpush.bf16.msrb.mxu3 %v2225_v8 }
  0x7e   :  { %1265 = vmatpush.bf16.msrb.mxu0 %v2200_v9 }
  0x7f   :  { %1278 = vmatpush.bf16.msrb.mxu1 %v2208_v10 }
  0x80   :  { %1291 = vmatpush.bf16.msrb.mxu2 %v2216_v11 }
  0x81   :  { %1304 = vmatpush.bf16.msrb.mxu3 %v2224_v12  ;;  %1266 = vmatmul.bf16.vlgmr.msrb.gmra.mxu0 %v810_v13  ;;  %v1310_v13 = vld [vmem:[%s2790_s5] sm:$0x3]  ;;  %s2291_s5 = smov [#allocation4]  }
  0x82   :  { %1279 = vmatmul.bf16.vlgmr.msrb.gmra.mxu1 %v811_v14  ;;  %1361 = vmatpush.msra.mxu0 %v1316_v55  ;;  %s1564_s3 = sshll.u32 %s2291_s5, 4  ;;  %s1565_s3 = int_to_ptr.vmem [resolvable:$true] %s1564_s3 }
  0x83   :  { %1292 = vmatmul.bf16.vlgmr.msrb.gmra.mxu2 %v812_v15  ;;  %1381 = vmatpush.msra.mxu1 %v1317_v56 }
  0x84   :  { %1305 = vmatmul.bf16.vlgmr.msrb.gmra.mxu3 %v813_v16  ;;  %1401 = vmatpush.msra.mxu2 %v1318_v53 }
  0x85   :  { %1421 = vmatpush.msra.mxu3 %v1319_v54  ;;  %1441 = vmatpush.msrb.mxu0 %v1320_v60 }
  0x86   :  { %1481 = vmatpush.msrb.mxu2 %v1322_v58  ;;  %1461 = vmatpush.msrb.mxu1 %v1321_v61 }
  0x87   :  { %1501 = vmatpush.msrb.mxu3 %v1323_v59 }
  0x9e   :  { %v578_v17 = vpop.f32.mrf.mxu0 }
  0x9f   :  { %v591_v18 = vpop.f32.mrf.mxu1  ;;  %v579_v25 = vadd.f32 %v2234_v23, %v578_v17 }
  0xa1   :  { %v592_v27 = vadd.f32 %v591_v18, %v579_v25 }
  0xa6   :  { %v604_v19 = vpop.f32.mrf.mxu2  ;;  %v580_v21 = vpop.f32.mrf.mxu0 }
  0xa7   :  { %v617_v20 = vpop.f32.mrf.mxu3  ;;  %v593_v22 = vpop.f32.mrf.mxu1  ;;  %v605_v28 = vadd.f32 %v604_v19, %v592_v27  ;;  %v1324_v19 = vld [vmem:[%s2792_s7] sm:$0xff] }
  0xa8   :  { %v1329_v21 = vperm.slane %v1324_v19, 3  ;;  %v1326_v22 = vperm.slane %v1324_v19, 0  ;;  %v1327_v23 = vperm.slane %v1324_v19, 1  ;;  %v1331_v25 = vperm.slane %v1324_v19, 5 }
  0xa9   :  { %v618_v29 = vadd.f32 %v617_v20, %v605_v28  ;;  %v1328_v20 = vperm.slane %v1324_v19, 2 }
  0xae   :  { %v606_v24 = vpop.f32.mrf.mxu2 }
  0xaf   :  { %v619_v26 = vpop.f32.mrf.mxu3  ;;  %v1330_v24 = vperm.slane %v1324_v19, 4 }
  0xbe   :  { %v630_v30 = vpop.f32.mrf.mxu0 }
  0xbf   :  { %v631_v31 = vadd.f32 %v630_v30, %v618_v29  ;;  %v643_v32 = vpop.f32.mrf.mxu1 }
  0xc1   :  { %v644_v33 = vadd.f32 %v643_v32, %v631_v31 }
  0xc6   :  { %v656_v34 = vpop.f32.mrf.mxu2  ;;  %v632_v37 = vpop.f32.mrf.mxu0 }
  0xc7   :  { %v657_v35 = vadd.f32 %v656_v34, %v644_v33  ;;  %v669_v36 = vpop.f32.mrf.mxu3  ;;  %v645_v39 = vpop.f32.mrf.mxu1  ;;  %v1332_v37 = vperm.slane %v1324_v19, 6 }
  0xc9   :  { %v670_v38 = vadd.f32 %v669_v36, %v657_v35 }
  0xcb   :  { %1507 = vst.msk [vmem:[#allocation2] sm:$0x3] %vm1506_vm0, %v670_v38 }
  0xcc   :  { %1558 = dma.vmem_to_hbm [thread:$0]  %s1554_s12, 32, %s1556_s15, [#allocation3]  }
  0xce   :  { %v658_v40 = vpop.f32.mrf.mxu2 }
  0xcf   :  { %v671_v41 = vpop.f32.mrf.mxu3 }
  0xde   :  { %v1215_v42 = vpop.f32.mrf.mxu0 }
  0xdf   :  { %v1228_v43 = vpop.f32.mrf.mxu1  ;;  %v1216_v51 = vadd.f32 %v2235_v48, %v1215_v42 }
  0xe1   :  { %v1229_v52 = vadd.f32 %v1228_v43, %v1216_v51 }
  0xe6   :  { %v1241_v44 = vpop.f32.mrf.mxu2  ;;  %v1217_v46 = vpop.f32.mrf.mxu0 }
  0xe7   :  { %v1254_v45 = vpop.f32.mrf.mxu3  ;;  %v1230_v47 = vpop.f32.mrf.mxu1  ;;  %v1242_v57 = vadd.f32 %v1241_v44, %v1229_v52 }
  0xe9   :  { %v1255_v62 = vadd.f32 %v1254_v45, %v1242_v57 }
  0xee   :  { %v1243_v49 = vpop.f32.mrf.mxu2 }
  0xef   :  { %v1256_v50 = vpop.f32.mrf.mxu3 }
  0xfe   :  { %v1267_v63 = vpop.f32.mrf.mxu0 }
  0xff   :  { %v1280_v0 = vpop.f32.mrf.mxu1  ;;  %v1268_v1 = vadd.f32 %v1267_v63, %v1255_v62 }
 0x101   :  { %v1281_v2 = vadd.f32 %v1280_v0, %v1268_v1 }
 0x106   :  { %v1293_v3 = vpop.f32.mrf.mxu2  ;;  %v1269_v6 = vpop.f32.mrf.mxu0 }
 0x107   :  { %v1306_v4 = vpop.f32.mrf.mxu3  ;;  %v1294_v5 = vadd.f32 %v1293_v3, %v1281_v2  ;;  %v1282_v7 = vpop.f32.mrf.mxu1 }
 0x109   :  { %v1307_v8 = vadd.f32 %v1306_v4, %v1294_v5 }
 0x10b   :  { %v1311_v9 = vmul.f32 0.5, %v1307_v8  ;;  %1508 = vst.msk [vmem:[#allocation4] sm:$0x3] %vm1506_vm0, %v1307_v8 }
 0x10c   :  { %1569 = dma.vmem_to_hbm [thread:$0]  %s1565_s3, 32, %s1567_s17, [#allocation5]  }
 0x10d   :  { %v1312_v10 = vmul.f32 1.442695, %v1311_v9 }
 0x10e   :  { %v1295_v11 = vpop.f32.mrf.mxu2 }
 0x10f   :  { %v1308_v12 = vpop.f32.mrf.mxu3  ;;  %2236 = vpow2.f32 %v1312_v10 }
 0x115   :  { %v2237_v14 = vpop.eup %2236 }
 0x116   :  { %v1314_v15 = vmul.f32 %v2237_v14, %v1310_v13 }
 0x118   :  { %v1315_v16 = vadd.f32 %v1314_v15, %v670_v38  ;;  %v1333_v38 = vperm.slane %v1324_v19, 7 }
 0x11a   :  { %2096 = vmatmul.msk.f32.vlgmr.msra.gmra.mxu0 %vm1342_vm1, %v1315_v16  ;;  %2097 = vmatmul.msk.f32.vlgmr.msra.gmra.mxu1 %vm1342_vm1, %v1315_v16 }
 0x11b   :  { %2098 = vmatmul.msk.f32.vlgmr.msra.gmra.mxu2 %vm1342_vm1, %v1315_v16  ;;  %2099 = vmatmul.msk.f32.vlgmr.msra.gmra.mxu3 %vm1342_vm1, %v1315_v16 }
 0x122   :  { %2100 = vmatmul.msk.f32.vlgmr.msrb.gmra.mxu0 %vm1342_vm1, %v1315_v16  ;;  %2101 = vmatmul.msk.f32.vlgmr.msrb.gmra.mxu1 %vm1342_vm1, %v1315_v16 }
 0x123   :  { %2102 = vmatmul.msk.f32.vlgmr.msrb.gmra.mxu2 %vm1342_vm1, %v1315_v16  ;;  %2103 = vmatmul.msk.f32.vlgmr.msrb.gmra.mxu3 %vm1342_vm1, %v1315_v16 }
 0x197   :  { %v1363_v17 = vpop.f32.mrf.mxu0  ;;  %v1383_v18 = vpop.f32.mrf.mxu1 }
 0x198   :  { %v1364_v32 = vadd.f32 %v1363_v17, %v1326_v22  ;;  %v1384_v33 = vadd.f32 %v1383_v18, %v1327_v23 }
 0x19a   :  { %v1509_v39 = vpack.c.bf16 %v1384_v33, %v1364_v32 }
 0x19c   :  { %v1517_v47 = vrot.slane %v1509_v39, 3 }
 0x19e   :  { %v1403_v26 = vpop.f32.mrf.mxu2  ;;  %v1423_v27 = vpop.f32.mrf.mxu3  ;;  %v1527_v54 = vsel %vm1524_vm3, %v1509_v39, %v1517_v47 }
 0x19f   :  { %v1404_v28 = vadd.f32 %v1403_v26, %v1328_v20  ;;  %v1424_v29 = vadd.f32 %v1423_v27, %v1329_v21  ;;  %v1443_v30 = vpop.f32.mrf.mxu0  ;;  %v1463_v31 = vpop.f32.mrf.mxu1 }
 0x1a0   :  { %v1444_v34 = vadd.f32 %v1443_v30, %v1330_v24  ;;  %v1464_v35 = vadd.f32 %v1463_v31, %v1331_v25 }
 0x1a1   :  { %v1510_v36 = vpack.c.bf16 %v1424_v29, %v1404_v28 }
 0x1a2   :  { %v1511_v40 = vpack.c.bf16 %v1464_v35, %v1444_v34 }
 0x1a3   :  { %v1518_v43 = vrot.slane %v1510_v36, 6  ;;  %v1519_v44 = vrot.slane %v1510_v36, 1 }
 0x1a4   :  { %v1520_v48 = vrot.slane %v1511_v40, 4  ;;  %v1521_v49 = vrot.slane %v1511_v40, 7 }
 0x1a5   :  { %v1531_v51 = vsel %vm1528_vm2, %v1518_v43, %v1519_v44 }
 0x1a6   :  { %v1483_v41 = vpop.f32.mrf.mxu2  ;;  %v1503_v42 = vpop.f32.mrf.mxu3  ;;  %v1537_v55 = vsel %vm1534_vm5, %v1520_v48, %v1521_v49  ;;  %v1533_v57 = vsel %vm1532_vm4, %v1527_v54, %v1531_v51 }
 0x1a7   :  { %v1484_v45 = vadd.f32 %v1483_v41, %v1332_v37  ;;  %v1504_v46 = vadd.f32 %v1503_v42, %v1333_v38 }
 0x1a9   :  { %v1512_v50 = vpack.c.bf16 %v1504_v46, %v1484_v45 }
 0x1ab   :  { %v1522_v52 = vrot.slane %v1512_v50, 2  ;;  %v1523_v53 = vrot.slane %v1512_v50, 5 }
 0x1ad   :  { %v1541_v56 = vsel %vm1538_vm6, %v1522_v52, %v1523_v53 }
 0x1ae   :  { %v1543_v58 = vsel %vm1542_vm7, %v1537_v55, %v1541_v56 }
 0x1af   :  { %v1545_v59 = vsel %vm1544_vm8, %v1533_v57, %v1543_v58 }
 0x1b0   :  { %1547 = vst [vmem:[%s2795_s10] sm:$0xff] %v1545_v59 }
 0x1b1   :  { %2286 = dma.done.wait [#allocation3], 32  }
 0x1b2   :  { %2287 = vsyncadd [#allocation3], 4294967264 }
 0x1b3   :  { %2288 = dma.done.wait [#allocation5], 32  }
 0x1b4   :  { %2289 = vsyncadd [#allocation5], 4294967264 }
 0x1b5   :  { %1582 = vsyncpa [#allocation3], 1 }
 0x1b6   :  { %1583 = vsyncpa [#allocation5], 1 }

// kernel: conv_vae_forward.11
= control target key start
LH: loop header
LB: loop body
LE: loop exit
PB: predicated region body
PF: predicated region fallthrough
CT: control target
= control target key end

     0   :  { %vm79_vm0 = vcmask 257024   ;;  %s231_s0 = inlined_call_operand.vmem [shape: f32[128,32], index: 0, kind: input, shape index: {}]   ;;  %s232_s1 = inlined_call_operand.vmem [shape: f32[1,32], index: 1, kind: input, shape index: {}]   ;;  %s233_s2 = inlined_call_operand.vmem [shape: bf16[128,32], index: 2, kind: output, shape index: {}]  }
   0x1   :  { %v11_v0 = vld [vmem:[%s231_s0] sm:$0xff]  ;;  %v12_v2 = vld [vmem:[%s231_s0 + $0x8] sm:$0xff]  ;;  %v13_v3 = vld [vmem:[%s231_s0 + $0x10] sm:$0xff] }
   0x2   :  { %v100_v1 = vld [vmem:[%s232_s1] ss:$0 sm:$0xff]  ;;  %v14_v4 = vld [vmem:[%s231_s0 + $0x18] sm:$0xff]  ;;  %v16_v10 = vld [vmem:[%s231_s0 + $0x28] sm:$0xff] }
   0x3   :  { %v31_v5 = vadd.f32 %v100_v1, %v11_v0  ;;  %v32_v6 = vadd.f32 %v100_v1, %v12_v2  ;;  %v33_v7 = vadd.f32 %v100_v1, %v13_v3  ;;  %v34_v8 = vadd.f32 %v100_v1, %v14_v4  ;;  %v15_v9 = vld [vmem:[%s231_s0 + $0x20] sm:$0xff]  ;;  %v17_v11 = vld [vmem:[%s231_s0 + $0x30] sm:$0xff]  ;;  %v18_v15 = vld [vmem:[%s231_s0 + $0x38] sm:$0xff] }
   0x4   :  { %v35_v12 = vadd.f32 %v100_v1, %v15_v9  ;;  %v36_v13 = vadd.f32 %v100_v1, %v16_v10  ;;  %v37_v14 = vadd.f32 %v100_v1, %v17_v11  ;;  %v19_v20 = vld [vmem:[%s231_s0 + $0x40] sm:$0xff]  ;;  %v38_v24 = vadd.f32 %v100_v1, %v18_v15  ;;  %v20_v25 = vld [vmem:[%s231_s0 + $0x48] sm:$0xff]  ;;  %v21_v26 = vld [vmem:[%s231_s0 + $0x50] sm:$0xff] }
   0x5   :  { %v47_v16 = vmax.f32 %v31_v5, 0.0  ;;  %v48_v17 = vmax.f32 %v32_v6, 0.0  ;;  %v49_v18 = vmax.f32 %v33_v7, 0.0  ;;  %v50_v19 = vmax.f32 %v34_v8, 0.0  ;;  %v22_v27 = vld [vmem:[%s231_s0 + $0x58] sm:$0xff]  ;;  %v23_v31 = vld [vmem:[%s231_s0 + $0x60] sm:$0xff] }
   0x6   :  { %v51_v21 = vmax.f32 %v35_v12, 0.0  ;;  %v52_v22 = vmax.f32 %v36_v13, 0.0  ;;  %v53_v23 = vmax.f32 %v37_v14, 0.0  ;;  %v24_v32 = vld [vmem:[%s231_s0 + $0x68] sm:$0xff]  ;;  %v54_v35 = vmax.f32 %v38_v24, 0.0  ;;  %v25_v36 = vld [vmem:[%s231_s0 + $0x70] sm:$0xff] }
   0x7   :  { %v63_v28 = vpack.c.bf16 %v47_v16, %v47_v16  ;;  %v64_v29 = vpack.c.bf16 %v48_v17, %v48_v17  ;;  %v65_v30 = vpack.c.bf16 %v49_v18, %v49_v18  ;;  %v66_v33 = vpack.c.bf16 %v50_v19, %v50_v19  ;;  %v26_v41 = vld [vmem:[%s231_s0 + $0x78] sm:$0xff] }
   0x8   :  { %v67_v34 = vpack.c.bf16 %v51_v21, %v51_v21  ;;  %v39_v37 = vadd.f32 %v100_v1, %v19_v20  ;;  %v40_v38 = vadd.f32 %v100_v1, %v20_v25  ;;  %v41_v39 = vadd.f32 %v100_v1, %v21_v26 }
   0x9   :  { %80 = vst.msk [vmem:[%s233_s2] sm:$0xf] %vm79_vm0, %v63_v28  ;;  %v42_v40 = vadd.f32 %v100_v1, %v22_v27  ;;  %v68_v42 = vpack.c.bf16 %v52_v22, %v52_v22  ;;  %v69_v43 = vpack.c.bf16 %v53_v23, %v53_v23  ;;  %v43_v44 = vadd.f32 %v100_v1, %v23_v31 }
   0xa   :  { %81 = vst.msk [vmem:[%s233_s2 + $0x4] sm:$0xf] %vm79_vm0, %v64_v29  ;;  %v44_v45 = vadd.f32 %v100_v1, %v24_v32  ;;  %v55_v46 = vmax.f32 %v39_v37, 0.0  ;;  %v56_v47 = vmax.f32 %v40_v38, 0.0  ;;  %v57_v48 = vmax.f32 %v41_v39, 0.0 }
   0xb   :  { %82 = vst.msk [vmem:[%s233_s2 + $0x8] sm:$0xf] %vm79_vm0, %v65_v30  ;;  %v45_v49 = vadd.f32 %v100_v1, %v25_v36  ;;  %v70_v50 = vpack.c.bf16 %v54_v35, %v54_v35  ;;  %v58_v51 = vmax.f32 %v42_v40, 0.0  ;;  %v46_v52 = vadd.f32 %v100_v1, %v26_v41 }
   0xc   :  { %83 = vst.msk [vmem:[%s233_s2 + $0xc] sm:$0xf] %vm79_vm0, %v66_v33  ;;  %v71_v53 = vpack.c.bf16 %v55_v46, %v55_v46  ;;  %v59_v54 = vmax.f32 %v43_v44, 0.0  ;;  %v72_v55 = vpack.c.bf16 %v56_v47, %v56_v47  ;;  %v60_v56 = vmax.f32 %v44_v45, 0.0 }
   0xd   :  { %84 = vst.msk [vmem:[%s233_s2 + $0x10] sm:$0xf] %vm79_vm0, %v67_v34  ;;  %v73_v57 = vpack.c.bf16 %v57_v48, %v57_v48  ;;  %v61_v58 = vmax.f32 %v45_v49, 0.0  ;;  %v74_v59 = vpack.c.bf16 %v58_v51, %v58_v51  ;;  %v62_v60 = vmax.f32 %v46_v52, 0.0 }
   0xe   :  { %85 = vst.msk [vmem:[%s233_s2 + $0x14] sm:$0xf] %vm79_vm0, %v68_v42  ;;  %v75_v61 = vpack.c.bf16 %v59_v54, %v59_v54  ;;  %v76_v62 = vpack.c.bf16 %v60_v56, %v60_v56 }
   0xf   :  { %86 = vst.msk [vmem:[%s233_s2 + $0x18] sm:$0xf] %vm79_vm0, %v69_v43  ;;  %v77_v63 = vpack.c.bf16 %v61_v58, %v61_v58  ;;  %v78_v0 = vpack.c.bf16 %v62_v60, %v62_v60 }
  0x10   :  { %87 = vst.msk [vmem:[%s233_s2 + $0x1c] sm:$0xf] %vm79_vm0, %v70_v50 }
  0x11   :  { %88 = vst.msk [vmem:[%s233_s2 + $0x20] sm:$0xf] %vm79_vm0, %v71_v53 }
  0x12   :  { %89 = vst.msk [vmem:[%s233_s2 + $0x24] sm:$0xf] %vm79_vm0, %v72_v55 }
  0x13   :  { %90 = vst.msk [vmem:[%s233_s2 + $0x28] sm:$0xf] %vm79_vm0, %v73_v57 }
  0x14   :  { %91 = vst.msk [vmem:[%s233_s2 + $0x2c] sm:$0xf] %vm79_vm0, %v74_v59 }
  0x15   :  { %92 = vst.msk [vmem:[%s233_s2 + $0x30] sm:$0xf] %vm79_vm0, %v75_v61 }
  0x16   :  { %93 = vst.msk [vmem:[%s233_s2 + $0x34] sm:$0xf] %vm79_vm0, %v76_v62 }
  0x17   :  { %94 = vst.msk [vmem:[%s233_s2 + $0x38] sm:$0xf] %vm79_vm0, %v77_v63 }
  0x18   :  { %95 = vst.msk [vmem:[%s233_s2 + $0x3c] sm:$0xf] %vm79_vm0, %v78_v0 }

// kernel: conv_vae_forward.12
= control target key start
LH: loop header
LB: loop body
LE: loop exit
PB: predicated region body
PF: predicated region fallthrough
CT: control target
= control target key end

     0   :  { %vm91_vm0 = vcmask 261120   ;;  %vm165_vm1 = vcmask 72704   ;;  %s376_s1 = inlined_call_operand.vmem [shape: bf16[32,9], index: 1, kind: input, shape index: {}]   ;;  %s377_s0 = inlined_call_operand.vmem [shape: bf16[128,32], index: 0, kind: input, shape index: {}]   ;;  %s378_s2 = inlined_call_operand.vmem [shape: f32[1,9], index: 2, kind: input, shape index: {}]   ;;  %s379_s3 = inlined_call_operand.vmem [shape: f32[128,9], index: 3, kind: output, shape index: {}]  }
   0x1   :  { %v243_v0 = vld [vmem:[%s376_s1 + $0x8] sm:$0xff]  ;;  %v242_v1 = vld [vmem:[%s376_s1] sm:$0xff]  ;;  %v236_v3 = vld [vmem:[%s377_s0 + $0x10] sm:$0xff] }
   0x2   :  { %122 = vmatpush.bf16.msra.mxu0 %v243_v0  ;;  %244 = vmatpush.bf16.msra.mxu1 %v243_v0  ;;  %v234_v2 = vld [vmem:[%s377_s0] sm:$0xff]  ;;  %v240_v5 = vld [vmem:[%s377_s0 + $0x30] sm:$0xff]  ;;  %v235_v6 = vld [vmem:[%s377_s0 + $0x8] sm:$0xff] }
   0x3   :  { %245 = vmatpush.bf16.msra.mxu2 %v243_v0  ;;  %246 = vmatpush.bf16.msra.mxu3 %v243_v0  ;;  %v238_v4 = vld [vmem:[%s377_s0 + $0x20] sm:$0xff]  ;;  %v237_v7 = vld [vmem:[%s377_s0 + $0x18] sm:$0xff]  ;;  %v239_v8 = vld [vmem:[%s377_s0 + $0x28] sm:$0xff] }
   0x4   :  { %v241_v9 = vld [vmem:[%s377_s0 + $0x38] sm:$0xff]  ;;  %v250_v10 = vld [vmem:[%s378_s2] ss:$0 sm:$0xff] }
   0x6   :  { %123 = vmatpush.bf16.msra.mxu0 %v242_v1  ;;  %247 = vmatpush.bf16.msra.mxu1 %v242_v1 }
   0x7   :  { %248 = vmatpush.bf16.msra.mxu2 %v242_v1  ;;  %249 = vmatpush.bf16.msra.mxu3 %v242_v1 }
   0x9   :  { %226 = vmatmul.msk.bf16.vlgmr.msra.gmra.mxu0 %vm91_vm0, %v234_v2  ;;  %228 = vmatmul.msk.bf16.vlgmr.msra.gmra.mxu1 %vm91_vm0, %v236_v3 }
   0xa   :  { %230 = vmatmul.msk.bf16.vlgmr.msra.gmra.mxu2 %vm91_vm0, %v238_v4  ;;  %232 = vmatmul.msk.bf16.vlgmr.msra.gmra.mxu3 %vm91_vm0, %v240_v5 }
  0x19   :  { %227 = vmatmul.msk.bf16.gmra.mxu0 %vm91_vm0, %v235_v6  ;;  %229 = vmatmul.msk.bf16.gmra.mxu1 %vm91_vm0, %v237_v7 }
  0x1a   :  { %231 = vmatmul.msk.bf16.gmra.mxu2 %vm91_vm0, %v239_v8  ;;  %233 = vmatmul.msk.bf16.gmra.mxu3 %vm91_vm0, %v241_v9 }
  0x86   :  { %v125_v11 = vpop.f32.mrf.mxu0  ;;  %v135_v12 = vpop.f32.mrf.mxu1 }
  0x87   :  { %v126_v13 = vadd.f32 %v250_v10, %v125_v11  ;;  %v136_v14 = vadd.f32 %v250_v10, %v135_v12 }
  0x89   :  { %166 = vst.msk [vmem:[%s379_s3] sm:$0xff] %vm165_vm1, %v126_v13 }
  0x8a   :  { %170 = vst.msk [vmem:[%s379_s3 + $0x20] sm:$0xff] %vm165_vm1, %v136_v14 }
  0x8d   :  { %v145_v15 = vpop.f32.mrf.mxu2  ;;  %v155_v16 = vpop.f32.mrf.mxu3 }
  0x8e   :  { %v146_v17 = vadd.f32 %v250_v10, %v145_v15  ;;  %v156_v18 = vadd.f32 %v250_v10, %v155_v16  ;;  %v127_v19 = vpop.f32.mrf.mxu0  ;;  %v137_v20 = vpop.f32.mrf.mxu1 }
  0x8f   :  { %v128_v21 = vadd.f32 %v250_v10, %v127_v19  ;;  %v138_v22 = vadd.f32 %v250_v10, %v137_v20 }
  0x90   :  { %174 = vst.msk [vmem:[%s379_s3 + $0x40] sm:$0xff] %vm165_vm1, %v146_v17 }
  0x91   :  { %178 = vst.msk [vmem:[%s379_s3 + $0x60] sm:$0xff] %vm165_vm1, %v156_v18 }
  0x92   :  { %167 = vst.msk [vmem:[%s379_s3 + $0x8] sm:$0xff] %vm165_vm1, %v128_v21 }
  0x93   :  { %171 = vst.msk [vmem:[%s379_s3 + $0x28] sm:$0xff] %vm165_vm1, %v138_v22 }
  0x95   :  { %v147_v23 = vpop.f32.mrf.mxu2  ;;  %v157_v24 = vpop.f32.mrf.mxu3 }
  0x96   :  { %v148_v25 = vadd.f32 %v250_v10, %v147_v23  ;;  %v158_v26 = vadd.f32 %v250_v10, %v157_v24  ;;  %v130_v27 = vpop.f32.mrf.mxu0  ;;  %v140_v28 = vpop.f32.mrf.mxu1 }
  0x97   :  { %v131_v29 = vadd.f32 %v250_v10, %v130_v27  ;;  %v141_v30 = vadd.f32 %v250_v10, %v140_v28 }
  0x98   :  { %175 = vst.msk [vmem:[%s379_s3 + $0x48] sm:$0xff] %vm165_vm1, %v148_v25 }
  0x99   :  { %179 = vst.msk [vmem:[%s379_s3 + $0x68] sm:$0xff] %vm165_vm1, %v158_v26 }
  0x9a   :  { %168 = vst.msk [vmem:[%s379_s3 + $0x10] sm:$0xff] %vm165_vm1, %v131_v29 }
  0x9b   :  { %172 = vst.msk [vmem:[%s379_s3 + $0x30] sm:$0xff] %vm165_vm1, %v141_v30 }
  0x9d   :  { %v150_v31 = vpop.f32.mrf.mxu2  ;;  %v160_v32 = vpop.f32.mrf.mxu3 }
  0x9e   :  { %v151_v33 = vadd.f32 %v250_v10, %v150_v31  ;;  %v161_v34 = vadd.f32 %v250_v10, %v160_v32  ;;  %v132_v35 = vpop.f32.mrf.mxu0  ;;  %v142_v36 = vpop.f32.mrf.mxu1 }
  0x9f   :  { %v133_v37 = vadd.f32 %v250_v10, %v132_v35  ;;  %v143_v38 = vadd.f32 %v250_v10, %v142_v36 }
  0xa0   :  { %176 = vst.msk [vmem:[%s379_s3 + $0x50] sm:$0xff] %vm165_vm1, %v151_v33 }
  0xa1   :  { %180 = vst.msk [vmem:[%s379_s3 + $0x70] sm:$0xff] %vm165_vm1, %v161_v34 }
  0xa2   :  { %169 = vst.msk [vmem:[%s379_s3 + $0x18] sm:$0xff] %vm165_vm1, %v133_v37 }
  0xa3   :  { %173 = vst.msk [vmem:[%s379_s3 + $0x38] sm:$0xff] %vm165_vm1, %v143_v38 }
  0xa5   :  { %v152_v39 = vpop.f32.mrf.mxu2  ;;  %v162_v40 = vpop.f32.mrf.mxu3 }
  0xa6   :  { %v153_v41 = vadd.f32 %v250_v10, %v152_v39  ;;  %v163_v42 = vadd.f32 %v250_v10, %v162_v40 }
  0xa8   :  { %177 = vst.msk [vmem:[%s379_s3 + $0x58] sm:$0xff] %vm165_vm1, %v153_v41 }
  0xa9   :  { %181 = vst.msk [vmem:[%s379_s3 + $0x78] sm:$0xff] %vm165_vm1, %v163_v42 }

// kernel: conv_vae_forward.13
= control target key start
LH: loop header
LB: loop body
LE: loop exit
PB: predicated region body
PF: predicated region fallthrough
CT: control target
= control target key end

     0   :  { %vm145_vm0 = vcmask 7168   ;;  %s747_s1 = inlined_call_operand.<no memory space> [shape: f32[1,1], index: 1, kind: input, shape index: {}]   ;;  %s748_s0 = inlined_call_operand.vmem [shape: f32[512,1], index: 0, kind: input, shape index: {}]   ;;  %s749_s2 = inlined_call_operand.vmem [shape: f32[512,1], index: 2, kind: output, shape index: {}]  }
   0x1   :  { %v7_v0 = vstv %s747_s1  ;;  %v13_v1 = vld [vmem:[%s748_s0] sm:$0xff]  ;;  %v14_v2 = vld [vmem:[%s748_s0 + $0x8] sm:$0xff]  ;;  %v15_v3 = vld [vmem:[%s748_s0 + $0x10] sm:$0xff] }
   0x2   :  { %8 = vst [vmem:[#allocation2] sm:$0x1] %v7_v0  ;;  %v16_v5 = vld [vmem:[%s748_s0 + $0x18] sm:$0xff]  ;;  %v17_v6 = vld [vmem:[%s748_s0 + $0x20] sm:$0xff]  ;;  %v18_v10 = vld [vmem:[%s748_s0 + $0x28] sm:$0xff] }
   0x3   :  { %v19_v12 = vld [vmem:[%s748_s0 + $0x30] sm:$0xff]  ;;  %v20_v14 = vld [vmem:[%s748_s0 + $0x38] sm:$0xff]  ;;  %v21_v16 = vld [vmem:[%s748_s0 + $0x40] sm:$0xff] }
   0x4   :  { %v22_v18 = vld [vmem:[%s748_s0 + $0x48] sm:$0xff]  ;;  %v23_v20 = vld [vmem:[%s748_s0 + $0x50] sm:$0xff]  ;;  %v24_v22 = vld [vmem:[%s748_s0 + $0x58] sm:$0xff] }
   0x5   :  { %v25_v24 = vld [vmem:[%s748_s0 + $0x60] sm:$0xff]  ;;  %v26_v26 = vld [vmem:[%s748_s0 + $0x68] sm:$0xff]  ;;  %v27_v28 = vld [vmem:[%s748_s0 + $0x70] sm:$0xff] }
   0x6   :  { %v28_v30 = vld [vmem:[%s748_s0 + $0x78] sm:$0xff]  ;;  %v29_v32 = vld [vmem:[%s748_s0 + $0x80] sm:$0xff]  ;;  %v30_v34 = vld [vmem:[%s748_s0 + $0x88] sm:$0xff] }
   0x7   :  { %v31_v36 = vld [vmem:[%s748_s0 + $0x90] sm:$0xff]  ;;  %v32_v38 = vld [vmem:[%s748_s0 + $0x98] sm:$0xff]  ;;  %v33_v40 = vld [vmem:[%s748_s0 + $0xa0] sm:$0xff] }
   0x8   :  { %v34_v42 = vld [vmem:[%s748_s0 + $0xa8] sm:$0xff]  ;;  %v35_v44 = vld [vmem:[%s748_s0 + $0xb0] sm:$0xff]  ;;  %v36_v46 = vld [vmem:[%s748_s0 + $0xb8] sm:$0xff] }
   0x9   :  { %v242_v4 = vld [vmem:[#allocation2] ss:$0 sm:$0xff]  ;;  %v38_v50 = vld [vmem:[%s748_s0 + $0xc8] sm:$0xff]  ;;  %v39_v52 = vld [vmem:[%s748_s0 + $0xd0] sm:$0xff] }
   0xa   :  { %v81_v7 = vadd.f32 %v242_v4, %v13_v1  ;;  %v82_v8 = vadd.f32 %v242_v4, %v14_v2  ;;  %v83_v9 = vadd.f32 %v242_v4, %v15_v3  ;;  %v84_v11 = vadd.f32 %v242_v4, %v16_v5  ;;  %v37_v48 = vld [vmem:[%s748_s0 + $0xc0] sm:$0xff]  ;;  %v40_v54 = vld [vmem:[%s748_s0 + $0xd8] sm:$0xff]  ;;  %v42_v58 = vld [vmem:[%s748_s0 + $0xe8] sm:$0xff] }
   0xb   :  { %v85_v13 = vadd.f32 %v242_v4, %v17_v6  ;;  %v86_v15 = vadd.f32 %v242_v4, %v18_v10  ;;  %v87_v17 = vadd.f32 %v242_v4, %v19_v12  ;;  %v88_v19 = vadd.f32 %v242_v4, %v20_v14  ;;  %v41_v56 = vld [vmem:[%s748_s0 + $0xe0] sm:$0xff]  ;;  %v43_v60 = vld [vmem:[%s748_s0 + $0xf0] sm:$0xff]  ;;  %v44_v62 = vld [vmem:[%s748_s0 + $0xf8] sm:$0xff] }
   0xc   :  { %146 = vst.msk [vmem:[%s749_s2] sm:$0xff] %vm145_vm0, %v81_v7  ;;  %v89_v21 = vadd.f32 %v242_v4, %v21_v16  ;;  %v90_v23 = vadd.f32 %v242_v4, %v22_v18  ;;  %v91_v25 = vadd.f32 %v242_v4, %v23_v20  ;;  %v92_v27 = vadd.f32 %v242_v4, %v24_v22  ;;  %v45_v0 = vld [vmem:[%s748_s0 + $0x100] sm:$0xff]  ;;  %v46_v2 = vld [vmem:[%s748_s0 + $0x108] sm:$0xff]  ;;  %v47_v5 = vld [vmem:[%s748_s0 + $0x110] sm:$0xff] }
   0xd   :  { %147 = vst.msk [vmem:[%s749_s2 + $0x8] sm:$0xff] %vm145_vm0, %v82_v8  ;;  %v93_v29 = vadd.f32 %v242_v4, %v25_v24  ;;  %v94_v31 = vadd.f32 %v242_v4, %v26_v26  ;;  %v95_v33 = vadd.f32 %v242_v4, %v27_v28  ;;  %v96_v35 = vadd.f32 %v242_v4, %v28_v30  ;;  %v48_v7 = vld [vmem:[%s748_s0 + $0x118] sm:$0xff] }
   0xe   :  { %148 = vst.msk [vmem:[%s749_s2 + $0x10] sm:$0xff] %vm145_vm0, %v83_v9  ;;  %v97_v37 = vadd.f32 %v242_v4, %v29_v32  ;;  %v98_v39 = vadd.f32 %v242_v4, %v30_v34  ;;  %v99_v41 = vadd.f32 %v242_v4, %v31_v36  ;;  %v100_v43 = vadd.f32 %v242_v4, %v32_v38  ;;  %v49_v9 = vld [vmem:[%s748_s0 + $0x120] sm:$0xff] }
   0xf   :  { %149 = vst.msk [vmem:[%s749_s2 + $0x18] sm:$0xff] %vm145_vm0, %v84_v11  ;;  %v101_v45 = vadd.f32 %v242_v4, %v33_v40  ;;  %v102_v47 = vadd.f32 %v242_v4, %v34_v42  ;;  %v103_v49 = vadd.f32 %v242_v4, %v35_v44  ;;  %v104_v51 = vadd.f32 %v242_v4, %v36_v46  ;;  %v50_v11 = vld [vmem:[%s748_s0 + $0x128] sm:$0xff] }
  0x10   :  { %150 = vst.msk [vmem:[%s749_s2 + $0x20] sm:$0xff] %vm145_vm0, %v85_v13  ;;  %v105_v53 = vadd.f32 %v242_v4, %v37_v48  ;;  %v106_v55 = vadd.f32 %v242_v4, %v38_v50  ;;  %v107_v57 = vadd.f32 %v242_v4, %v39_v52  ;;  %v108_v59 = vadd.f32 %v242_v4, %v40_v54  ;;  %v51_v13 = vld [vmem:[%s748_s0 + $0x130] sm:$0xff] }
  0x11   :  { %151 = vst.msk [vmem:[%s749_s2 + $0x28] sm:$0xff] %vm145_vm0, %v86_v15  ;;  %v109_v61 = vadd.f32 %v242_v4, %v41_v56  ;;  %v110_v63 = vadd.f32 %v242_v4, %v42_v58  ;;  %v111_v1 = vadd.f32 %v242_v4, %v43_v60  ;;  %v112_v3 = vadd.f32 %v242_v4, %v44_v62  ;;  %v52_v15 = vld [vmem:[%s748_s0 + $0x138] sm:$0xff] }
  0x12   :  { %152 = vst.msk [vmem:[%s749_s2 + $0x30] sm:$0xff] %vm145_vm0, %v87_v17  ;;  %v113_v6 = vadd.f32 %v242_v4, %v45_v0  ;;  %v114_v8 = vadd.f32 %v242_v4, %v46_v2  ;;  %v115_v10 = vadd.f32 %v242_v4, %v47_v5  ;;  %v116_v12 = vadd.f32 %v242_v4, %v48_v7  ;;  %v53_v17 = vld [vmem:[%s748_s0 + $0x140] sm:$0xff] }
  0x13   :  { %153 = vst.msk [vmem:[%s749_s2 + $0x38] sm:$0xff] %vm145_vm0, %v88_v19  ;;  %v117_v14 = vadd.f32 %v242_v4, %v49_v9  ;;  %v118_v16 = vadd.f32 %v242_v4, %v50_v11  ;;  %v119_v18 = vadd.f32 %v242_v4, %v51_v13  ;;  %v54_v19 = vld [vmem:[%s748_s0 + $0x148] sm:$0xff]  ;;  %v120_v20 = vadd.f32 %v242_v4, %v52_v15 }
  0x14   :  { %154 = vst.msk [vmem:[%s749_s2 + $0x40] sm:$0xff] %vm145_vm0, %v89_v21  ;;  %v55_v21 = vld [vmem:[%s748_s0 + $0x150] sm:$0xff]  ;;  %v121_v22 = vadd.f32 %v242_v4, %v53_v17  ;;  %v122_v24 = vadd.f32 %v242_v4, %v54_v19 }
  0x15   :  { %155 = vst.msk [vmem:[%s749_s2 + $0x48] sm:$0xff] %vm145_vm0, %v90_v23  ;;  %v56_v23 = vld [vmem:[%s748_s0 + $0x158] sm:$0xff]  ;;  %v123_v26 = vadd.f32 %v242_v4, %v55_v21 }
  0x16   :  { %156 = vst.msk [vmem:[%s749_s2 + $0x50] sm:$0xff] %vm145_vm0, %v91_v25  ;;  %v57_v25 = vld [vmem:[%s748_s0 + $0x160] sm:$0xff]  ;;  %v124_v28 = vadd.f32 %v242_v4, %v56_v23 }
  0x17   :  { %157 = vst.msk [vmem:[%s749_s2 + $0x58] sm:$0xff] %vm145_vm0, %v92_v27  ;;  %v58_v27 = vld [vmem:[%s748_s0 + $0x168] sm:$0xff]  ;;  %v125_v30 = vadd.f32 %v242_v4, %v57_v25 }
  0x18   :  { %158 = vst.msk [vmem:[%s749_s2 + $0x60] sm:$0xff] %vm145_vm0, %v93_v29  ;;  %v59_v29 = vld [vmem:[%s748_s0 + $0x170] sm:$0xff]  ;;  %v126_v32 = vadd.f32 %v242_v4, %v58_v27 }
  0x19   :  { %159 = vst.msk [vmem:[%s749_s2 + $0x68] sm:$0xff] %vm145_vm0, %v94_v31  ;;  %v60_v31 = vld [vmem:[%s748_s0 + $0x178] sm:$0xff]  ;;  %v127_v34 = vadd.f32 %v242_v4, %v59_v29 }
  0x1a   :  { %160 = vst.msk [vmem:[%s749_s2 + $0x70] sm:$0xff] %vm145_vm0, %v95_v33  ;;  %v61_v33 = vld [vmem:[%s748_s0 + $0x180] sm:$0xff]  ;;  %v128_v36 = vadd.f32 %v242_v4, %v60_v31 }
  0x1b   :  { %161 = vst.msk [vmem:[%s749_s2 + $0x78] sm:$0xff] %vm145_vm0, %v96_v35  ;;  %v62_v35 = vld [vmem:[%s748_s0 + $0x188] sm:$0xff]  ;;  %v129_v38 = vadd.f32 %v242_v4, %v61_v33 }
  0x1c   :  { %162 = vst.msk [vmem:[%s749_s2 + $0x80] sm:$0xff] %vm145_vm0, %v97_v37  ;;  %v63_v37 = vld [vmem:[%s748_s0 + $0x190] sm:$0xff]  ;;  %v130_v40 = vadd.f32 %v242_v4, %v62_v35 }
  0x1d   :  { %163 = vst.msk [vmem:[%s749_s2 + $0x88] sm:$0xff] %vm145_vm0, %v98_v39  ;;  %v64_v39 = vld [vmem:[%s748_s0 + $0x198] sm:$0xff]  ;;  %v131_v42 = vadd.f32 %v242_v4, %v63_v37 }
  0x1e   :  { %164 = vst.msk [vmem:[%s749_s2 + $0x90] sm:$0xff] %vm145_vm0, %v99_v41  ;;  %v65_v41 = vld [vmem:[%s748_s0 + $0x1a0] sm:$0xff]  ;;  %v132_v44 = vadd.f32 %v242_v4, %v64_v39 }
  0x1f   :  { %165 = vst.msk [vmem:[%s749_s2 + $0x98] sm:$0xff] %vm145_vm0, %v100_v43  ;;  %v66_v43 = vld [vmem:[%s748_s0 + $0x1a8] sm:$0xff]  ;;  %v133_v46 = vadd.f32 %v242_v4, %v65_v41 }
  0x20   :  { %166 = vst.msk [vmem:[%s749_s2 + $0xa0] sm:$0xff] %vm145_vm0, %v101_v45  ;;  %v67_v45 = vld [vmem:[%s748_s0 + $0x1b0] sm:$0xff]  ;;  %v134_v48 = vadd.f32 %v242_v4, %v66_v43 }
  0x21   :  { %167 = vst.msk [vmem:[%s749_s2 + $0xa8] sm:$0xff] %vm145_vm0, %v102_v47  ;;  %v68_v47 = vld [vmem:[%s748_s0 + $0x1b8] sm:$0xff]  ;;  %v135_v50 = vadd.f32 %v242_v4, %v67_v45 }
  0x22   :  { %168 = vst.msk [vmem:[%s749_s2 + $0xb0] sm:$0xff] %vm145_vm0, %v103_v49  ;;  %v69_v49 = vld [vmem:[%s748_s0 + $0x1c0] sm:$0xff]  ;;  %v136_v52 = vadd.f32 %v242_v4, %v68_v47 }
  0x23   :  { %169 = vst.msk [vmem:[%s749_s2 + $0xb8] sm:$0xff] %vm145_vm0, %v104_v51  ;;  %v70_v51 = vld [vmem:[%s748_s0 + $0x1c8] sm:$0xff]  ;;  %v137_v54 = vadd.f32 %v242_v4, %v69_v49 }
  0x24   :  { %170 = vst.msk [vmem:[%s749_s2 + $0xc0] sm:$0xff] %vm145_vm0, %v105_v53  ;;  %v71_v53 = vld [vmem:[%s748_s0 + $0x1d0] sm:$0xff]  ;;  %v138_v56 = vadd.f32 %v242_v4, %v70_v51 }
  0x25   :  { %171 = vst.msk [vmem:[%s749_s2 + $0xc8] sm:$0xff] %vm145_vm0, %v106_v55  ;;  %v72_v55 = vld [vmem:[%s748_s0 + $0x1d8] sm:$0xff]  ;;  %v139_v58 = vadd.f32 %v242_v4, %v71_v53 }
  0x26   :  { %172 = vst.msk [vmem:[%s749_s2 + $0xd0] sm:$0xff] %vm145_vm0, %v107_v57  ;;  %v73_v57 = vld [vmem:[%s748_s0 + $0x1e0] sm:$0xff]  ;;  %v140_v60 = vadd.f32 %v242_v4, %v72_v55 }
  0x27   :  { %173 = vst.msk [vmem:[%s749_s2 + $0xd8] sm:$0xff] %vm145_vm0, %v108_v59  ;;  %v74_v59 = vld [vmem:[%s748_s0 + $0x1e8] sm:$0xff]  ;;  %v141_v62 = vadd.f32 %v242_v4, %v73_v57 }
  0x28   :  { %174 = vst.msk [vmem:[%s749_s2 + $0xe0] sm:$0xff] %vm145_vm0, %v109_v61  ;;  %v75_v61 = vld [vmem:[%s748_s0 + $0x1f0] sm:$0xff]  ;;  %v142_v0 = vadd.f32 %v242_v4, %v74_v59 }
  0x29   :  { %175 = vst.msk [vmem:[%s749_s2 + $0xe8] sm:$0xff] %vm145_vm0, %v110_v63  ;;  %v76_v63 = vld [vmem:[%s748_s0 + $0x1f8] sm:$0xff] }
  0x2a   :  { %176 = vst.msk [vmem:[%s749_s2 + $0xf0] sm:$0xff] %vm145_vm0, %v111_v1  ;;  %v143_v1 = vadd.f32 %v242_v4, %v75_v61  ;;  %v144_v2 = vadd.f32 %v242_v4, %v76_v63 }
  0x2b   :  { %177 = vst.msk [vmem:[%s749_s2 + $0xf8] sm:$0xff] %vm145_vm0, %v112_v3 }
  0x2c   :  { %178 = vst.msk [vmem:[%s749_s2 + $0x100] sm:$0xff] %vm145_vm0, %v113_v6 }
  0x2d   :  { %179 = vst.msk [vmem:[%s749_s2 + $0x108] sm:$0xff] %vm145_vm0, %v114_v8 }
  0x2e   :  { %180 = vst.msk [vmem:[%s749_s2 + $0x110] sm:$0xff] %vm145_vm0, %v115_v10 }
  0x2f   :  { %181 = vst.msk [vmem:[%s749_s2 + $0x118] sm:$0xff] %vm145_vm0, %v116_v12 }
  0x30   :  { %182 = vst.msk [vmem:[%s749_s2 + $0x120] sm:$0xff] %vm145_vm0, %v117_v14 }
  0x31   :  { %183 = vst.msk [vmem:[%s749_s2 + $0x128] sm:$0xff] %vm145_vm0, %v118_v16 }
  0x32   :  { %184 = vst.msk [vmem:[%s749_s2 + $0x130] sm:$0xff] %vm145_vm0, %v119_v18 }
  0x33   :  { %185 = vst.msk [vmem:[%s749_s2 + $0x138] sm:$0xff] %vm145_vm0, %v120_v20 }
  0x34   :  { %186 = vst.msk [vmem:[%s749_s2 + $0x140] sm:$0xff] %vm145_vm0, %v121_v22 }
  0x35   :  { %187 = vst.msk [vmem:[%s749_s2 + $0x148] sm:$0xff] %vm145_vm0, %v122_v24 }
  0x36   :  { %188 = vst.msk [vmem:[%s749_s2 + $0x150] sm:$0xff] %vm145_vm0, %v123_v26 }
  0x37   :  { %189 = vst.msk [vmem:[%s749_s2 + $0x158] sm:$0xff] %vm145_vm0, %v124_v28 }
  0x38   :  { %190 = vst.msk [vmem:[%s749_s2 + $0x160] sm:$0xff] %vm145_vm0, %v125_v30 }
  0x39   :  { %191 = vst.msk [vmem:[%s749_s2 + $0x168] sm:$0xff] %vm145_vm0, %v126_v32 }
  0x3a   :  { %192 = vst.msk [vmem:[%s749_s2 + $0x170] sm:$0xff] %vm145_vm0, %v127_v34 }
  0x3b   :  { %193 = vst.msk [vmem:[%s749_s2 + $0x178] sm:$0xff] %vm145_vm0, %v128_v36 }
  0x3c   :  { %194 = vst.msk [vmem:[%s749_s2 + $0x180] sm:$0xff] %vm145_vm0, %v129_v38 }
  0x3d   :  { %195 = vst.msk [vmem:[%s749_s2 + $0x188] sm:$0xff] %vm145_vm0, %v130_v40 }
  0x3e   :  { %196 = vst.msk [vmem:[%s749_s2 + $0x190] sm:$0xff] %vm145_vm0, %v131_v42 }
  0x3f   :  { %197 = vst.msk [vmem:[%s749_s2 + $0x198] sm:$0xff] %vm145_vm0, %v132_v44 }
  0x40   :  { %198 = vst.msk [vmem:[%s749_s2 + $0x1a0] sm:$0xff] %vm145_vm0, %v133_v46 }
  0x41   :  { %199 = vst.msk [vmem:[%s749_s2 + $0x1a8] sm:$0xff] %vm145_vm0, %v134_v48 }
  0x42   :  { %200 = vst.msk [vmem:[%s749_s2 + $0x1b0] sm:$0xff] %vm145_vm0, %v135_v50 }
  0x43   :  { %201 = vst.msk [vmem:[%s749_s2 + $0x1b8] sm:$0xff] %vm145_vm0, %v136_v52 }
  0x44   :  { %202 = vst.msk [vmem:[%s749_s2 + $0x1c0] sm:$0xff] %vm145_vm0, %v137_v54 }
  0x45   :  { %203 = vst.msk [vmem:[%s749_s2 + $0x1c8] sm:$0xff] %vm145_vm0, %v138_v56 }
  0x46   :  { %204 = vst.msk [vmem:[%s749_s2 + $0x1d0] sm:$0xff] %vm145_vm0, %v139_v58 }
  0x47   :  { %205 = vst.msk [vmem:[%s749_s2 + $0x1d8] sm:$0xff] %vm145_vm0, %v140_v60 }
  0x48   :  { %206 = vst.msk [vmem:[%s749_s2 + $0x1e0] sm:$0xff] %vm145_vm0, %v141_v62 }
  0x49   :  { %207 = vst.msk [vmem:[%s749_s2 + $0x1e8] sm:$0xff] %vm145_vm0, %v142_v0 }
  0x4a   :  { %208 = vst.msk [vmem:[%s749_s2 + $0x1f0] sm:$0xff] %vm145_vm0, %v143_v1 }
  0x4b   :  { %209 = vst.msk [vmem:[%s749_s2 + $0x1f8] sm:$0xff] %vm145_vm0, %v144_v2 }

</bundles_post_ra>
